<compile_context>
chip_gen: v7x
topology: tpu7x:2x2x1
jax: 0.10.0
libtpu: 0.0.40
codegen_flags: <defaults>
</compile_context>

<pallas_src>
import jax
import jax.numpy as jnp
from jax.experimental import pallas as pl
from jax.experimental.pallas import tpu as pltpu


def _round_up(x: int, m: int) -> int:
    return ((x + m - 1) // m) * m


def _vmem_capacity_bytes() -> int:
    try:
        return int(pltpu.get_tpu_info().vmem_capacity_bytes)
    except Exception:
        return 64 * 1024 * 1024  # conservative (v7x-sized); safe everywhere


def _make_kernel(resident_x1: bool, tk: int, tn: int):
    """Kernel: accumulate x2_tile @ x1_tile over the K grid axis into a f32
    scratch, then replicate the finished (tm, tn) tile into the 4 concat
    slots of the (tm, 4, tn) output block."""

    def kernel(x2_ref, x1_ref, o_ref, acc_ref):
        k = pl.program_id(2)

        @pl.when(k == 0)
        def _init():
            acc_ref[...] = jnp.zeros_like(acc_ref)

        if resident_x1:
            # x1 lives whole in VMEM (fetched once); slice the current tile.
            j = pl.program_id(1)
            koff = pl.multiple_of(k * tk, tk)
            joff = pl.multiple_of(j * tn, tn)
            b = x1_ref[pl.ds(koff, tk), pl.ds(joff, tn)]
        else:
            b = x1_ref[...]

        acc_ref[...] += jnp.dot(x2_ref[...], b,
                                preferred_element_type=jnp.float32)

        @pl.when(k == pl.num_programs(2) - 1)
        def _finalize():
            v = acc_ref[...].astype(o_ref.dtype)
            for r in range(4):          # 4 lane-dense replica stores
                o_ref[:, r, :] = v

    return kernel


def model_forward(x1, x2, *, tm=None, tk=None, tn=None,
                  vmem_budget_bytes=None, vmem_limit_bytes=None):
    """x1: (K, N), x2: (M, K) -> (M, 4*N) == torch.cat([x2@x1]*4, dim=1)."""
    K, N = x1.shape
    M, K2 = x2.shape
    assert K == K2, "inner dims of mm must match"

    dtype = jnp.result_type(x1.dtype, x2.dtype)
    x1 = x1.astype(dtype)
    x2 = x2.astype(dtype)
    itemsize = jnp.dtype(dtype).itemsize
    sub = {4: 8, 2: 16, 1: 32}.get(itemsize, 8)   # sublane packing per dtype

    # ---- per-generation VMEM budgets ----
    vmem_cap = _vmem_capacity_bytes()
    small_vmem = vmem_cap <= 64 * 1024 * 1024      # v7x-class: 64 MiB, 2 TCs
    if vmem_budget_bytes is None:
        vmem_budget_bytes = (40 if small_vmem else 56) * 1024 * 1024
    if vmem_limit_bytes is None:
        vmem_limit_bytes = (48 if small_vmem else 96) * 1024 * 1024

    # ---- tile selection (lane dims multiples of 128, sublanes of `sub`) ----
    if tk is None:
        tk = min(512, _round_up(K, 128))   # 512 is 256-aligned for the MXU
    tk = max(128, _round_up(tk, 128))
    tk = min(tk, _round_up(K, 128))
    Kp = _round_up(K, tk)
    Np = _round_up(N, 128)

    # Hold x1 fully resident in VMEM when it comfortably fits: constant block
    # index -> DMA'd once, never re-read per M tile.
    # (Priced double-buffered; TODO(synk): pipeline_mode=pl.Buffered(1) would
    #  halve this allocation.)
    x1_res_bytes = 2 * Kp * Np * itemsize
    resident = x1_res_bytes <= vmem_budget_bytes // 2

    def fixed_bytes(tn_):
        return x1_res_bytes if resident else 2 * tk * tn_ * itemsize

    def per_tm_bytes(tn_):
        # x2 block + (tm,4,tn) out block (double-buffered) + f32 acc, per row.
        return 2 * tk * itemsize + 8 * tn_ * itemsize + 4 * tn_

    if tn is None:
        tn = Np
        while tn > 128 and (vmem_budget_bytes - fixed_bytes(tn)
                            < per_tm_bytes(tn) * 4 * sub):
            tn = max(128, _round_up(tn // 2, 128))
    tn = min(max(128, _round_up(tn, 128)), Np)
    Np = _round_up(N, tn)

    if tm is None:
        avail = max(per_tm_bytes(tn) * sub,
                    vmem_budget_bytes - fixed_bytes(tn))
        tm = min(512, (max(sub, avail // per_tm_bytes(tn)) // sub) * sub)
    tm = min(tm, _round_up(M, sub))
    tm = max(sub, (tm // sub) * sub)

    # v7x megacore balance: with a single N tile, keep >= 2 M steps so both
    # TensorCores get work (cheap no-op on small M).
    if small_vmem and (Np // tn) == 1:
        tm = min(tm, max(sub, _round_up((M + 1) // 2, sub)))

    Mp = _round_up(M, tm)

    # ---- pad to tile multiples (zero K-padding does not change the matmul) --
    if (Mp, Kp) != (M, K):
        x2 = jnp.pad(x2, ((0, Mp - M), (0, Kp - K)))
    if (Kp, Np) != (K, N):
        x1 = jnp.pad(x1, ((0, Kp - K), (0, Np - N)))

    grid = (Mp // tm, Np // tn, Kp // tk)

    if resident:
        x1_spec = pl.BlockSpec((Kp, Np), lambda i, j, k: (0, 0))
    else:
        x1_spec = pl.BlockSpec((tk, tn), lambda i, j, k: (k, j))

    cost = pl.CostEstimate(
        flops=2 * M * N * K,                                  # deduped matmul
        transcendentals=0,
        bytes_accessed=(M * K + K * N + 4 * M * N) * itemsize,
    )

    # TODO(synk): if still VMEM-bound on v7x, switch the output to
    # memory_space=pl.ANY and issue 4 manual make_async_copy stores of the
    # single (tm, tn) cast buffer instead of the (tm, 4, tn) auto block.
    out_p = pl.pallas_call(
        _make_kernel(resident, tk, tn),
        out_shape=jax.ShapeDtypeStruct((Mp, 4, Np), dtype),
        grid=grid,
        in_specs=[
            pl.BlockSpec((tm, tk), lambda i, j, k: (i, k)),   # x2 tile
            x1_spec,                                          # x1 (resident/streamed)
        ],
        out_specs=pl.BlockSpec((tm, 4, tn), lambda i, j, k: (i, 0, j)),
        scratch_shapes=[pltpu.VMEM((tm, tn), jnp.float32)],
        compiler_params=pltpu.CompilerParams(
            dimension_semantics=("parallel", "parallel", "arbitrary"),
            vmem_limit_bytes=vmem_limit_bytes,
        ),
        cost_estimate=cost,
    )(x2, x1)

    # Cheap un-padding: row slice + (optional) column slice, then a row-major
    # merge of the (4, N) trailing dims -> (M, 4*N).  No concat rebuild.
    if Mp != M:
        out_p = out_p[:M]
    if Np != N:
        out_p = out_p[:, :, :N]
    return out_p.reshape(M, 4 * N)


if __name__ == "__main__":
    key = jax.random.PRNGKey(0)
    k1, k2 = jax.random.split(key)

    def reference(x1, x2):
        v = jnp.dot(x2.astype(jnp.float32), x1.astype(jnp.float32),
                    precision=jax.lax.Precision.HIGHEST)
        v = v.astype(jnp.result_type(x1.dtype, x2.dtype))
        return jnp.concatenate([v, v, v, v], axis=1)

    # Small-integer-valued inputs keep every matmul path exact, so the checks
    # are independent of MXU precision mode.
    def randi(k, shape, dtype):
        return jax.random.randint(k, shape, -4, 5).astype(dtype)

    # Case 1: tile-aligned shapes, multi-step K reduction (explicit tiles).
    M, K, N = 256, 384, 256
    x1a = randi(k1, (K, N), jnp.float32)
    x2a = randi(k2, (M, K), jnp.float32)
    out_a = jax.block_until_ready(model_forward(x1a, x2a, tm=128, tk=128))
    assert out_a.shape == (M, 4 * N), out_a.shape
    assert jnp.allclose(out_a, reference(x1a, x2a), atol=1e-5), "case 1 mismatch"

    # Case 2: tiny, unaligned shapes (padding + un-pad path); mirrors the tiny
    # 2-D mm + cat structure of the original torch module.
    m, k, n = 4, 36, 100
    x1b = randi(k1, (k, n), jnp.float32)
    x2b = randi(k2, (m, k), jnp.float32)
    out_b = jax.block_until_ready(model_forward(x1b, x2b))
    assert out_b.shape == (m, 4 * n), out_b.shape
    assert jnp.allclose(out_b, reference(x1b, x2b), atol=1e-5), "case 2 mismatch"

    # Case 3: bf16 inputs (16-row sublane packing, auto-tiling, M split).
    m3, k3, n3 = 48, 256, 256
    x1c = randi(k1, (k3, n3), jnp.bfloat16)
    x2c = randi(k2, (m3, k3), jnp.bfloat16)
    out_c = jax.block_until_ready(model_forward(x1c, x2c))
    ref_c = reference(x1c, x2c)
    assert out_c.shape == (m3, 4 * n3), out_c.shape
    assert jnp.allclose(out_c.astype(jnp.float32), ref_c.astype(jnp.float32),
                        atol=1e-5), "case 3 mismatch"

    print("KERNEL_OK")
</pallas_src>

<mosaic_0001>
module attributes {stable_mosaic.version = 11 : i64} {
  func.func @kernel(%arg0: i32, %arg1: i32, %arg2: i32, %arg3: memref<128x128xf32, #tpu.memory_space<vmem>>, %arg4: memref<384x256xf32, #tpu.memory_space<vmem>>, %arg5: memref<128x4x256xf32, #tpu.memory_space<vmem>>, %arg6: memref<128x256xf32, #tpu.memory_space<vmem>>) attributes {dimension_semantics = [#tpu.dimension_semantics<parallel>, #tpu.dimension_semantics<parallel>, #tpu.dimension_semantics<arbitrary>], iteration_bounds = array<i64: 2, 1, 3>, scalar_prefetch = 0 : i64, scratch_operands = 1 : i64, tpu.core_type = #tpu.core_type<tc>, window_params = [{transform_indices = @transform_0, window_bounds = array<i64: 128, 128>}, {pipeline_mode = #tpu.pipeline_mode<synchronous>, transform_indices = @transform_1, window_bounds = array<i64: 384, 256>}, {transform_indices = @transform_2, window_bounds = array<i64: 128, 4, 256>}]} {
    %c0_i32 = arith.constant 0 : i32
    %0 = arith.cmpi eq, %arg2, %c0_i32 : i32
    %1 = arith.extui %0 : i1 to i32
    %c0_i32_0 = arith.constant 0 : i32
    %2 = arith.cmpi ne, %1, %c0_i32_0 : i32
    scf.if %2 {
      %cst_7 = arith.constant 0.000000e+00 : f32
      %18 = vector.broadcast %cst_7 : f32 to vector<128x256xf32>
      %c0_8 = arith.constant 0 : index
      %c0_9 = arith.constant 0 : index
      %19 = vector.load %arg6[%c0_8, %c0_9] : memref<128x256xf32, #tpu.memory_space<vmem>>, vector<128x256xf32>
      tpu.vector_store %arg6[%c0_8, %c0_9], %18 {strides = array<i32>} : memref<128x256xf32, #tpu.memory_space<vmem>>, vector<128x256xf32>,
    } else {
    }
    %c128_i32 = arith.constant 128 : i32
    %3 = arith.muli %arg2, %c128_i32 : i32
    %4 = tpu.assume_multiple %3, 128 : i32
    %c256_i32 = arith.constant 256 : i32
    %5 = arith.muli %arg1, %c256_i32 : i32
    %6 = tpu.assume_multiple %5, 256 : i32
    %7 = arith.index_cast %4 : i32 to index
    %8 = arith.index_cast %6 : i32 to index
    %9 = vector.load %arg4[%7, %8] : memref<384x256xf32, #tpu.memory_space<vmem>>, vector<128x256xf32>
    %c0 = arith.constant 0 : index
    %c0_1 = arith.constant 0 : index
    %10 = vector.load %arg6[%c0, %c0_1] : memref<128x256xf32, #tpu.memory_space<vmem>>, vector<128x256xf32>
    %c0_2 = arith.constant 0 : index
    %c0_3 = arith.constant 0 : index
    %11 = vector.load %arg3[%c0_2, %c0_3] : memref<128x128xf32, #tpu.memory_space<vmem>>, vector<128x128xf32>
    %cst = arith.constant dense<0.000000e+00> : vector<128x256xf32>
    %12 = tpu.matmul %11, %9, %cst {dimension_numbers = #tpu.dot_dimension_numbers<[1], [0], [0], [1], [0, 0, 1, 1], [], []>} : vector<128x128xf32>, vector<128x256xf32>, vector<128x256xf32> -> vector<128x256xf32>
    %13 = arith.addf %10, %12 : vector<128x256xf32>
    %c0_4 = arith.constant 0 : index
    %c0_5 = arith.constant 0 : index
    %14 = vector.load %arg6[%c0_4, %c0_5] : memref<128x256xf32, #tpu.memory_space<vmem>>, vector<128x256xf32>
    tpu.vector_store %arg6[%c0_4, %c0_5], %13 {strides = array<i32>} : memref<128x256xf32, #tpu.memory_space<vmem>>, vector<128x256xf32>,
    %c2_i32 = arith.constant 2 : i32
    %15 = arith.cmpi eq, %arg2, %c2_i32 : i32
    %16 = arith.extui %15 : i1 to i32
    %c0_i32_6 = arith.constant 0 : i32
    %17 = arith.cmpi ne, %16, %c0_i32_6 : i32
    scf.if %17 {
      %c0_7 = arith.constant 0 : index
      %c0_8 = arith.constant 0 : index
      %18 = vector.load %arg6[%c0_7, %c0_8] : memref<128x256xf32, #tpu.memory_space<vmem>>, vector<128x256xf32>
      %c0_9 = arith.constant 0 : index
      %c0_10 = arith.constant 0 : index
      %c0_11 = arith.constant 0 : index
      %19 = vector.load %arg5[%c0_9, %c0_10, %c0_11] : memref<128x4x256xf32, #tpu.memory_space<vmem>>, vector<128x1x256xf32>
      %20 = vector.shape_cast %19 : vector<128x1x256xf32> to vector<128x256xf32>
      %21 = vector.shape_cast %18 : vector<128x256xf32> to vector<128x1x256xf32>
      tpu.vector_store %arg5[%c0_9, %c0_10, %c0_11], %21 {strides = array<i32>} : memref<128x4x256xf32, #tpu.memory_space<vmem>>, vector<128x1x256xf32>,
      %c0_12 = arith.constant 0 : index
      %c1 = arith.constant 1 : index
      %c0_13 = arith.constant 0 : index
      %22 = vector.load %arg5[%c0_12, %c1, %c0_13] : memref<128x4x256xf32, #tpu.memory_space<vmem>>, vector<128x1x256xf32>
      %23 = vector.shape_cast %22 : vector<128x1x256xf32> to vector<128x256xf32>
      %24 = vector.shape_cast %18 : vector<128x256xf32> to vector<128x1x256xf32>
      tpu.vector_store %arg5[%c0_12, %c1, %c0_13], %24 {strides = array<i32>} : memref<128x4x256xf32, #tpu.memory_space<vmem>>, vector<128x1x256xf32>,
      %c0_14 = arith.constant 0 : index
      %c2 = arith.constant 2 : index
      %c0_15 = arith.constant 0 : index
      %25 = vector.load %arg5[%c0_14, %c2, %c0_15] : memref<128x4x256xf32, #tpu.memory_space<vmem>>, vector<128x1x256xf32>
      %26 = vector.shape_cast %25 : vector<128x1x256xf32> to vector<128x256xf32>
      %27 = vector.shape_cast %18 : vector<128x256xf32> to vector<128x1x256xf32>
      tpu.vector_store %arg5[%c0_14, %c2, %c0_15], %27 {strides = array<i32>} : memref<128x4x256xf32, #tpu.memory_space<vmem>>, vector<128x1x256xf32>,
      %c0_16 = arith.constant 0 : index
      %c3 = arith.constant 3 : index
      %c0_17 = arith.constant 0 : index
      %28 = vector.load %arg5[%c0_16, %c3, %c0_17] : memref<128x4x256xf32, #tpu.memory_space<vmem>>, vector<128x1x256xf32>
      %29 = vector.shape_cast %28 : vector<128x1x256xf32> to vector<128x256xf32>
      %30 = vector.shape_cast %18 : vector<128x256xf32> to vector<128x1x256xf32>
      tpu.vector_store %arg5[%c0_16, %c3, %c0_17], %30 {strides = array<i32>} : memref<128x4x256xf32, #tpu.memory_space<vmem>>, vector<128x1x256xf32>,
    } else {
    }
    return
  }
  func.func @transform_0(%arg0: i32, %arg1: i32, %arg2: i32) -> (i32, i32) {
    %c0_i32 = arith.constant 0 : i32
    return %arg0, %arg2 : i32, i32
  }
  func.func @transform_1(%arg0: i32, %arg1: i32, %arg2: i32) -> (i32, i32) {
    %c0_i32 = arith.constant 0 : i32
    %c0_i32_0 = arith.constant 0 : i32
    %c0_i32_1 = arith.constant 0 : i32
    return %c0_i32, %c0_i32_0 : i32, i32
  }
  func.func @transform_2(%arg0: i32, %arg1: i32, %arg2: i32) -> (i32, i32, i32) {
    %c0_i32 = arith.constant 0 : i32
    %c0_i32_0 = arith.constant 0 : i32
    return %arg0, %c0_i32, %arg1 : i32, i32, i32
  }
}

</mosaic_0001>

<bundles_post_ra>
// kernel: tpu_custom_call.1
= control target key start
LH: loop header
LB: loop body
LE: loop exit
PB: predicated region body
PF: predicated region fallthrough
CT: control target
= control target key end

     0   :  { %s5794_s0 = inlined_call_operand.hbm [shape: f32[256,384], index: 0, kind: input, shape index: {}]   ;;  %s5795_s1 = inlined_call_operand.hbm [shape: f32[384,256], index: 1, kind: input, shape index: {}]   ;;  %s5796_s2 = inlined_call_operand.hbm [shape: f32[256,4,256], index: 2, kind: output, shape index: {}]  }
   0x1   :  { %5807 = sst [smem:[#allocation16_spill]] %s5795_s1 }
   0x2   :  { %7 = vsyncpa [#allocation4], 0 }
   0x3   :  { %9 = vsyncpa [#allocation4 + $0x1], 0 }
   0x4   :  { %10 = vsyncpa [#allocation7], 0 }
   0x5   :  { %11 = vsyncpa [#allocation5], 0 }
   0x6   :  { %13 = vsyncpa [#allocation5 + $0x1], 0  ;;  %s3658_s9 = smov 0   ;;  %s3660_s10 = smov 0  }
   0x7   :  { %s3662_s11 = smov 0   ;;  %s3664_s12 = smov 0  }
   0x8   :  { %s3666_s13 = smov 0   ;;  %s3668_s14 = smov 0  }
   0x9   :  { %s3670_s15 = smov 0   ;;  %s3672_s16 = smov 0  }
   0xa   :  { %s3674_s17 = smov 0   ;;  %s3676_s18 = smov 0  }
   0xb   :  { %s3678_s19 = smov 0  }
   0xc LB: > { %5808 = sst [smem:[#allocation12_spill]] %s3620_s17  ;;  %s2702_s20 = sadd.s32 4294967295, %s3628_s19   ;;  %s3628_s19 = sphi %s3678_s19, %s19_s19   ;;  %s3624_s18 = sphi %s3676_s18, %s5843_s18   ;;  %s3620_s17 = sphi %s3674_s17, %s5842_s17   ;;  %s3616_s16 = sphi %s3672_s16, %s5841_s16   ;;  %s3612_s15 = sphi %s3670_s15, %s5832_s15   ;;  %s3608_s14 = sphi %s3668_s14, %s5840_s14   ;;  %s3604_s13 = sphi %s3666_s13, %s5839_s13   ;;  %s3600_s12 = sphi %s3664_s12, %s5838_s12   ;;  %s3596_s11 = sphi %s3662_s11, %s5837_s11   ;;  %s3592_s10 = sphi %s3660_s10, %s5836_s10   ;;  %s3588_s9 = sphi %s3658_s9, %s5835_s9  }
   0xd   : > { %s2703_s21 = sadd.s32 4294967294, %s3628_s19   ;;  %p54_p0 = scmp.ne.s32.totalorder %s3608_s14, %s3604_s13 }
   0xe   : > { %p55_p1 = scmp.eq.s32.totalorder %s3628_s19, 0  ;;  %p60_p2 = scmp.ne.s32.totalorder %s3604_s13, %s3600_s12 }
   0xf   : > { %p3718_p3 = scmp.eq.s32.totalorder %s2702_s20, 0  ;;  %p106_p5 = scmp.ne.s32.totalorder %s3596_s11, %s3592_s10 }
  0x10   : > { %p3723_p4 = por %p55_p1, %p54_p0  ;;  %p107_p7 = scmp.eq.s32.totalorder %s2702_s20, 5 }
  0x11   : > { %s5809_s23 = scalar_select %p3718_p3, 1, 0 }
  0x12   : > { %p3731_p6 = por %p3718_p3, %p60_p2  ;;  %p112_p8 = scmp.ne.s32.totalorder %s3592_s10, %s3588_s9 }
  0x13   : > { %p113_p9 = scmp.eq.s32.totalorder %s2703_s21, 5  ;;  %p3737_p10 = por %p107_p7, %p106_p5 }
  0x14   : > { %s5811_s26 = scalar_select %p3731_p6, 1, 0 }
  0x15   : > { %s5812_s27 = scalar_select %p3737_p10, 1, 0 }
  0x16   : > { %p2704_p11 = scmp.ge.s32.totalorder %s3628_s19, 1  ;;  %p3742_p12 = por %p113_p9, %p112_p8 }
  0x17   : > { %p120_p13 = scmp.lt.s32.totalorder %s3628_s19, 7  ;;  %s3630_s30 = smov [#allocation6]  }
  0x18   : > { %s5813_s28 = scalar_select %p3742_p12, 1, 0 }
  0x19   : > { %p3747_p0 = pnand %p2704_p11, %p120_p13  ;;  %s132_s3 = sshll.u32 %s3630_s30, 4  ;;  %s133_s3 = int_to_ptr.vmem [resolvable:$true] %s132_s3 }
  0x1a   : > { %5814 = sst [smem:[#allocation13_spill]] %s5813_s28  ;;  %p3310_p2 = scmp.lt.s32.totalorder %s3628_s19, 6 }
  0x1b   : > { %s5815_s29 = scalar_select %p3747_p0, 1, 0 }
  0x1c   : > { %p3297_p1 = pneg %p3747_p0  ;;  %p3762_p7 = pnand %p3310_p2, %p3723_p4 }
  0x1d   : > { %s5818_s1 = sld [smem:[#allocation16_spill]] }
  0x1e   : > { %p3756_p5 = pnand %p3297_p1, %p3718_p3 }
  0x1f   : > { %s5817_s5 = scalar_select %p3762_p7, 1, 0 }
  0x20   : > { %p3446_p9 = pneg %p3756_p5 }
  0x23   : > { %s3444_s8 = scalar_lea.hbm %s5818_s1, 12288 }
  0x24   : > { %p3445_p8 = scmp.ne.s32.totalorder %s5818_s1, %s3444_s8  ;;  %p3451_p1 = scmp.lt.u32.totalorder %s3444_s8, %s5818_s1 }
  0x26   : > { %p3447_p11 = pnand %p3446_p9, %p3445_p8 }
  0x28   : > { %p3448_p13 = pneg %p3447_p11 }
  0x2a   : > { %p3453_p4 = pnand %p3451_p1, %p3448_p13 }
  0x2c   : > { %3456 = shalt.err (!%p3453_p4)
}
  0x2d   : > { %s3457_s25 = scalar_lea.vmem %s133_s3, 12288  ;;  %p3465_p3 = scmp.lt.s32.totalorder %s133_s3, %s133_s3 }
  0x2e   : > { %p3458_p2 = scmp.ne.s32.totalorder %s133_s3, %s3457_s25  ;;  %p3466_p6 = scmp.lt.s32.totalorder %s3457_s25, %s3457_s25 }
  0x30   : > { %p3460_p12 = pnand %p3458_p2, %p3446_p9  ;;  %p3467_p0 = por %p3466_p6, %p3465_p3 }
  0x32   : > { %p3461_p10 = pneg %p3460_p12 }
  0x34   : > { %p3468_p7 = pnand %p3467_p0, %p3461_p10 }
  0x36   : > { %3471 = shalt.err (!%p3468_p7)
}
  0x37   : > { %s3631_s6 = smov 256   ;;  %s3632_s7 = smov 16  }
  0x38   : > { %3300 = dma.hbm_to_vmem [thread:$0]  (!%p3756_p5), %s5818_s1, 12288, %s133_s3, [#allocation7], %s3631_s6, %s3631_s6, %s3632_s7  }
  0x39   : > { %s31_s20 = sadd.s32 1, %s3620_s17  ;;  %s38_s21 = sadd.s32 1, %s3624_s18 }
  0x3a   : > { %p32_p3 = scmp.ge.s32.totalorder %s31_s20, 3  ;;  %s146_s30 = sand.u32 1, %s3608_s14  }
  0x3b   : > { %s2707_s25 = sshll.u32 %s146_s30, 7  ;;  %s3288_s4 = smul.u32 48, %s3624_s18 }
  0x3c   : > { %s5845_s20 = smov (%p32_p3, %s31_s20), 0  ;;  %s5847_s21 = smov (!%p32_p3, %s38_s21), %s3624_s18 }
  0x3d   : > { %5819 = sst [smem:[#allocation14_spill]] %s5845_s20  ;;  %s43_s22 = ssub.s32 %s3620_s17, %s5845_s20 }
  0x3e   : > { %p40_p6 = scmp.ge.s32.totalorder %s5847_s21, 2  ;;  %s150_s24 = scalar_lea.vmem [#allocation3], %s2707_s25 }
  0x3f   : > { %s159_s3 = sshll.u32 %s150_s24, 4  ;;  %s156_s6 = sadd.s32 %s3620_s17, %s3288_s4  ;;  %s3794_s3 = int_to_ptr.vmem [resolvable:$true] %s159_s3 }
  0x40   : > { %s5849_s21 = smov (%p40_p6, %s5847_s21), 0  ;;  %s2710_s8 = sshll.u32 %s156_s6, 7 }
  0x41   : > { %5820 = sst [smem:[#allocation15_spill]] %s5849_s21  ;;  %s42_s7 = ssub.s32 %s3624_s18, %s5849_s21 }
  0x42   : > { %s44_s12 = sor.u32 %s43_s22, %s42_s7  ;;  %p94_p10 = scmp.eq.s32.totalorder %s42_s7, 0 }
  0x43   : > { %p45_p12 = scmp.eq.s32.totalorder %s44_s12, 0  ;;  %s3801_s20 = scalar_lea.hbm %s5794_s0, %s2710_s8 }
  0x44   : > { %s5821_s25 = sadd.s32 1, %s3596_s11  ;;  %s5822_s4 = sadd.s32 1, %s3608_s14 }
  0x45   : > { %s3806_s24 = scalar_select %p94_p10, %s3596_s11, %s5821_s25  }
  0x46   : > { %s3811_s17 = scalar_select %p45_p12, %s3608_s14, %s5822_s4  }
  0x47   : > { %s3813_s21 = scalar_lea.sflag [#allocation4], %s146_s30  ;;  %s3472_s22 = scalar_lea.hbm %s3801_s20, 2048 }
  0x48   : > { %p3473_p0 = scmp.ne.s32.totalorder %s3801_s20, %s3472_s22  ;;  %p5823_p5 = scmp.ne.s32.totalorder %s5817_s5, 0 }
  0x49   : > { %s3477_s6 = scalar_lea.hbm %s5794_s0, 12288  ;;  %p3478_p11 = scmp.lt.u32.totalorder %s3801_s20, %s5794_s0 }
  0x4a   : > { %p3474_p7 = pneg %p5823_p5  ;;  %p3479_p13 = scmp.lt.u32.totalorder %s3477_s6, %s3472_s22 }
  0x4b   : > { %p3481_p4 = scmp.lt.u32.totalorder %s3472_s22, %s3801_s20 }
  0x4c   : > { %p3475_p8 = pnand %p3474_p7, %p3473_p0  ;;  %p3480_p1 = por %p3479_p13, %p3478_p11 }
  0x4e   : > { %p3476_p9 = pneg %p3475_p8  ;;  %p3482_p2 = por %p3481_p4, %p3480_p1 }
  0x50   : > { %p3483_p3 = pnand %p3482_p2, %p3476_p9 }
  0x52   : > { %3486 = shalt.err (!%p3483_p3)
}
  0x53   : > { %s3487_s30 = scalar_lea.vmem %s3794_s3, 2048  ;;  %s3633_s12 = smov [#allocation3]  }
  0x54   : > { %p3488_p6 = scmp.ne.s32.totalorder %s3794_s3, %s3487_s30  ;;  %s3492_s25 = sshll.u32 %s3633_s12, 4  ;;  %s3493_s25 = int_to_ptr.vmem [resolvable:$false] %s3492_s25 }
  0x55   : > { %s3494_s4 = scalar_lea.vmem %s3493_s25, 4096  ;;  %p3495_p0 = scmp.lt.s32.totalorder %s3794_s3, %s3493_s25 }
  0x56   : > { %p3490_p10 = pnand %p3488_p6, %p3474_p7  ;;  %p3496_p8 = scmp.lt.s32.totalorder %s3494_s4, %s3487_s30 }
  0x58   : > { %p3491_p12 = pneg %p3490_p10  ;;  %p3497_p11 = por %p3496_p8, %p3495_p0 }
  0x5a   : > { %p3498_p13 = pnand %p3497_p11, %p3491_p12 }
  0x5c   : > { %3501 = shalt.err (!%p3498_p13)
}
  0x5d   : > { %s3634_s22 = smov 384   ;;  %s3635_s1 = smov 128  }
  0x5e   : > { %s3636_s28 = smov 8   ;;  %p5824_p7 = scmp.ne.s32.totalorder %s5815_s29, 0 }
  0x5f   : > { %3304 = dma.hbm_to_vmem [thread:$0]  (!%p5823_p5), %s3801_s20, 2048, %s3794_s3, %s3813_s21, %s3634_s22, %s3635_s1, %s3636_s28  }
  0x60   : > { %171 = sbr.rel (%p5824_p7) target bundleno = 695 (0x2b7), region = 28  ;;  %s173_s6 = sand.u32 (!%p5824_p7), 1, %s3604_s13  }
  0x61   : > { %s2712_s7 = sshll.u32 (!%p5824_p7), %s173_s6, 7  ;;  %s174_s8 = scalar_lea.sflag (!%p5824_p7), [#allocation4], %s173_s6 }
  0x62   : > { %s3844_s30 = scalar_lea.vmem (!%p5824_p7), [#allocation3], %s2712_s7  ;;  %p5825_p9 = scmp.ne.s32.totalorder (!%p5824_p7), %s5811_s26, 0 }
  0x67   : > { %3575 = dma.done.wait (%p5825_p9), %s174_s8, 2048  }
  0x68   : > { %3577 = vsyncadd (%p5825_p9), %s174_s8, 4294965248  ;;  %p5826_p1 = scmp.ne.s32.totalorder %s5809_s23, 0 }
  0x6a   : > { %3579 = dma.done.wait (%p5826_p1), [#allocation7], 12288  }
  0x6b   : > { %3581 = vsyncadd (%p5826_p1), [#allocation7], 4294955008  ;;  %s199_s29 = sand.u32 1, %s3592_s10   ;;  %p2715_p5 = scmp.ne.s32.totalorder %s3612_s15, 0 }
  0x6c   : > { %s2714_s5 = sshll.u32 %s199_s29, 10  ;;  %v3637_v0 = vmov (!%p2715_p5), 0.0  }
  0x6d   : > { %s3857_s20 = scalar_lea.vmem [#allocation8], %s2714_s5  ;;  %208 = sbr.rel (%p2715_p5) target bundleno = 125 (0x7d), region = 40  ;;  %209 = vst [vmem:[#allocation2] sm:$0xff] (!%p2715_p5), %v3637_v0  ;;  %210 = vst [vmem:[#allocation2 + $0x8] sm:$0xff] (!%p2715_p5), %v3637_v0 }
  0x6e   : > { %211 = vst [vmem:[#allocation2 + $0x10] sm:$0xff] (!%p2715_p5), %v3637_v0  ;;  %212 = vst [vmem:[#allocation2 + $0x18] sm:$0xff] (!%p2715_p5), %v3637_v0 }
  0x6f   : > { %213 = vst [vmem:[#allocation2 + $0x20] sm:$0xff] (!%p2715_p5), %v3637_v0  ;;  %214 = vst [vmem:[#allocation2 + $0x28] sm:$0xff] (!%p2715_p5), %v3637_v0 }
  0x70   : > { %215 = vst [vmem:[#allocation2 + $0x30] sm:$0xff] (!%p2715_p5), %v3637_v0  ;;  %216 = vst [vmem:[#allocation2 + $0x38] sm:$0xff] (!%p2715_p5), %v3637_v0 }
  0x71   : > { %217 = vst [vmem:[#allocation2 + $0x40] sm:$0xff] (!%p2715_p5), %v3637_v0  ;;  %218 = vst [vmem:[#allocation2 + $0x48] sm:$0xff] (!%p2715_p5), %v3637_v0 }
  0x72   : > { %219 = vst [vmem:[#allocation2 + $0x50] sm:$0xff] (!%p2715_p5), %v3637_v0  ;;  %220 = vst [vmem:[#allocation2 + $0x58] sm:$0xff] (!%p2715_p5), %v3637_v0 }
  0x73   : > { %221 = vst [vmem:[#allocation2 + $0x60] sm:$0xff] (!%p2715_p5), %v3637_v0  ;;  %222 = vst [vmem:[#allocation2 + $0x68] sm:$0xff] (!%p2715_p5), %v3637_v0 }
  0x74   : > { %223 = vst [vmem:[#allocation2 + $0x70] sm:$0xff] %v3637_v0  ;;  %224 = vst [vmem:[#allocation2 + $0x78] sm:$0xff] %v3637_v0 }
  0x75   : > { %225 = vst [vmem:[#allocation2 + $0x80] sm:$0xff] %v3637_v0  ;;  %226 = vst [vmem:[#allocation2 + $0x88] sm:$0xff] %v3637_v0 }
  0x76   : > { %227 = vst [vmem:[#allocation2 + $0x90] sm:$0xff] %v3637_v0  ;;  %228 = vst [vmem:[#allocation2 + $0x98] sm:$0xff] %v3637_v0 }
  0x77   : > { %229 = vst [vmem:[#allocation2 + $0xa0] sm:$0xff] %v3637_v0  ;;  %230 = vst [vmem:[#allocation2 + $0xa8] sm:$0xff] %v3637_v0 }
  0x78   : > { %231 = vst [vmem:[#allocation2 + $0xb0] sm:$0xff] %v3637_v0  ;;  %232 = vst [vmem:[#allocation2 + $0xb8] sm:$0xff] %v3637_v0 }
  0x79   : > { %233 = vst [vmem:[#allocation2 + $0xc0] sm:$0xff] %v3637_v0  ;;  %234 = vst [vmem:[#allocation2 + $0xc8] sm:$0xff] %v3637_v0 }
  0x7a   : > { %235 = vst [vmem:[#allocation2 + $0xd0] sm:$0xff] %v3637_v0  ;;  %236 = vst [vmem:[#allocation2 + $0xd8] sm:$0xff] %v3637_v0 }
  0x7b   : > { %237 = vst [vmem:[#allocation2 + $0xe0] sm:$0xff] %v3637_v0  ;;  %238 = vst [vmem:[#allocation2 + $0xe8] sm:$0xff] %v3637_v0 }
  0x7c   : > { %239 = vst [vmem:[#allocation2 + $0xf0] sm:$0xff] %v3637_v0  ;;  %240 = vst [vmem:[#allocation2 + $0xf8] sm:$0xff] %v3637_v0 }
  0x7d PF: > { %s2716_s23 = sshll.u32 %s3612_s15, 7  ;;  %v3638_v1 = vmov 0.0   ;;  %v315_v50 = vld [vmem:[%s3844_s30] sm:$0xff]  ;;  %v316_v52 = vld [vmem:[%s3844_s30 + $0x8] sm:$0xff]  ;;  %v317_v54 = vld [vmem:[%s3844_s30 + $0x10] sm:$0xff]  ;;  %p2719_p4 = scmp.ne.s32.totalorder %s3612_s15, 2 }
  0x7e   : > { %s245_s26 = sshra.s32 %s2716_s23, 3  ;;  %395 = vmatprep.mubr.f32.mxu0 %v3638_v1  ;;  %443 = vmatprep.mubr.f32.mxu1 %v3638_v1  ;;  %v323_v51 = vld [vmem:[%s3844_s30 + $0x40] sm:$0xff]  ;;  %v324_v53 = vld [vmem:[%s3844_s30 + $0x48] sm:$0xff]  ;;  %v325_v55 = vld [vmem:[%s3844_s30 + $0x50] sm:$0xff] }
  0x7f   : > { %s3237_s21 = sshll.u32 %s245_s26, 4  ;;  %v318_v56 = vld [vmem:[%s3844_s30 + $0x18] sm:$0xff]  ;;  %v319_v58 = vld [vmem:[%s3844_s30 + $0x20] sm:$0xff]  ;;  %v320_v60 = vld [vmem:[%s3844_s30 + $0x28] sm:$0xff] }
  0x80   : > { %s3863_s3 = scalar_lea.vmem [#allocation6], %s3237_s21  ;;  %v326_v57 = vld [vmem:[%s3844_s30 + $0x58] sm:$0xff]  ;;  %v327_v59 = vld [vmem:[%s3844_s30 + $0x60] sm:$0xff]  ;;  %v328_v61 = vld [vmem:[%s3844_s30 + $0x68] sm:$0xff] }
  0x81   : > { %v252_v2 = vld [vmem:[%s3863_s3 + $0x8] sm:$0xff]  ;;  %v254_v3 = vld [vmem:[%s3863_s3 + $0x18] sm:$0xff]  ;;  %v251_v4 = vld [vmem:[%s3863_s3] sm:$0xff] }
  0x82   : > { %v3240_v5 = vpack.c.bf16 %v254_v3, %v252_v2  ;;  %v253_v6 = vld [vmem:[%s3863_s3 + $0x10] sm:$0xff]  ;;  %v256_v7 = vld [vmem:[%s3863_s3 + $0x28] sm:$0xff]  ;;  %v258_v8 = vld [vmem:[%s3863_s3 + $0x38] sm:$0xff] }
  0x83   : > { %v3242_v9 = vpack.c.bf16 %v253_v6, %v251_v4  ;;  %v3244_v10 = vpack.c.bf16 %v258_v8, %v256_v7  ;;  %v255_v11 = vld [vmem:[%s3863_s3 + $0x20] sm:$0xff]  ;;  %v257_v12 = vld [vmem:[%s3863_s3 + $0x30] sm:$0xff]  ;;  %v260_v13 = vld [vmem:[%s3863_s3 + $0x48] sm:$0xff] }
  0x84   : > { %3241 = vmatprep.subr.bf16.mxu0 %v3240_v5  ;;  %3272 = vmatprep.subr.bf16.mxu1 %v3240_v5  ;;  %v262_v14 = vld [vmem:[%s3863_s3 + $0x58] sm:$0xff]  ;;  %v3246_v15 = vpack.c.bf16 %v257_v12, %v255_v11  ;;  %v259_v17 = vld [vmem:[%s3863_s3 + $0x40] sm:$0xff]  ;;  %v261_v18 = vld [vmem:[%s3863_s3 + $0x50] sm:$0xff] }
  0x85   : > { %3243 = vmatpush1.bf16.msra.mxu0 %v3242_v9  ;;  %3280 = vmatpush1.bf16.msra.mxu1 %v3242_v9  ;;  %v3248_v16 = vpack.c.bf16 %v262_v14, %v260_v13  ;;  %v264_v19 = vld [vmem:[%s3863_s3 + $0x68] sm:$0xff]  ;;  %v266_v20 = vld [vmem:[%s3863_s3 + $0x78] sm:$0xff]  ;;  %v3250_v21 = vpack.c.bf16 %v261_v18, %v259_v17  ;;  %v263_v23 = vld [vmem:[%s3863_s3 + $0x60] sm:$0xff] }
  0x86   : > { %3245 = vmatprep.subr.bf16.mxu0 %v3244_v10  ;;  %3273 = vmatprep.subr.bf16.mxu1 %v3244_v10  ;;  %v3252_v22 = vpack.c.bf16 %v266_v20, %v264_v19  ;;  %v265_v24 = vld [vmem:[%s3863_s3 + $0x70] sm:$0xff]  ;;  %v268_v25 = vld [vmem:[%s3863_s3 + $0x88] sm:$0xff]  ;;  %v270_v26 = vld [vmem:[%s3863_s3 + $0x98] sm:$0xff] }
  0x87   : > { %v3254_v27 = vpack.c.bf16 %v265_v24, %v263_v23  ;;  %v3256_v28 = vpack.c.bf16 %v270_v26, %v268_v25  ;;  %v267_v29 = vld [vmem:[%s3863_s3 + $0x80] sm:$0xff]  ;;  %v269_v30 = vld [vmem:[%s3863_s3 + $0x90] sm:$0xff]  ;;  %v272_v31 = vld [vmem:[%s3863_s3 + $0xa8] sm:$0xff] }
  0x88   : > { %v274_v32 = vld [vmem:[%s3863_s3 + $0xb8] sm:$0xff]  ;;  %v3258_v33 = vpack.c.bf16 %v269_v30, %v267_v29  ;;  %v271_v35 = vld [vmem:[%s3863_s3 + $0xa0] sm:$0xff]  ;;  %v273_v36 = vld [vmem:[%s3863_s3 + $0xb0] sm:$0xff] }
  0x89   : > { %3247 = vmatpush1.bf16.msra.mxu0 %v3246_v15  ;;  %3281 = vmatpush1.bf16.msra.mxu1 %v3246_v15  ;;  %v3260_v34 = vpack.c.bf16 %v274_v32, %v272_v31  ;;  %v276_v37 = vld [vmem:[%s3863_s3 + $0xc8] sm:$0xff]  ;;  %v278_v38 = vld [vmem:[%s3863_s3 + $0xd8] sm:$0xff]  ;;  %v3262_v39 = vpack.c.bf16 %v273_v36, %v271_v35  ;;  %v275_v41 = vld [vmem:[%s3863_s3 + $0xc0] sm:$0xff] }
  0x8a   : > { %3249 = vmatprep.subr.bf16.mxu0 %v3248_v16  ;;  %3274 = vmatprep.subr.bf16.mxu1 %v3248_v16  ;;  %v3264_v40 = vpack.c.bf16 %v278_v38, %v276_v37  ;;  %v277_v42 = vld [vmem:[%s3863_s3 + $0xd0] sm:$0xff]  ;;  %v280_v43 = vld [vmem:[%s3863_s3 + $0xe8] sm:$0xff]  ;;  %v282_v44 = vld [vmem:[%s3863_s3 + $0xf8] sm:$0xff] }
  0x8b   : > { %v3266_v45 = vpack.c.bf16 %v277_v42, %v275_v41  ;;  %v3268_v46 = vpack.c.bf16 %v282_v44, %v280_v43  ;;  %v279_v47 = vld [vmem:[%s3863_s3 + $0xe0] sm:$0xff]  ;;  %v281_v48 = vld [vmem:[%s3863_s3 + $0xf0] sm:$0xff]  ;;  %v322_v0 = vld [vmem:[%s3844_s30 + $0x38] sm:$0xff] }
  0x8c   : > { %v3270_v49 = vpack.c.bf16 %v281_v48, %v279_v47  ;;  %v321_v62 = vld [vmem:[%s3844_s30 + $0x30] sm:$0xff]  ;;  %v330_v2 = vld [vmem:[%s3844_s30 + $0x78] sm:$0xff]  ;;  %v283_v3 = vld [vmem:[#allocation2] sm:$0xff] }
  0x8d   : > { %3251 = vmatpush1.bf16.msra.mxu0 %v3250_v21  ;;  %3282 = vmatpush1.bf16.msra.mxu1 %v3250_v21  ;;  %v329_v63 = vld [vmem:[%s3844_s30 + $0x70] sm:$0xff]  ;;  %v299_v4 = vld [vmem:[#allocation2 + $0x80] sm:$0xff]  ;;  %v284_v5 = vld [vmem:[#allocation2 + $0x8] sm:$0xff] }
  0x8e   : > { %3253 = vmatprep.subr.bf16.mxu0 %v3252_v22  ;;  %3275 = vmatprep.subr.bf16.mxu1 %v3252_v22  ;;  %v300_v6 = vld [vmem:[#allocation2 + $0x88] sm:$0xff]  ;;  %v285_v15 = vld [vmem:[#allocation2 + $0x10] sm:$0xff]  ;;  %v302_v17 = vld [vmem:[#allocation2 + $0x98] sm:$0xff] }
  0x8f   : > { %v301_v16 = vld [vmem:[#allocation2 + $0x90] sm:$0xff]  ;;  %v287_v26 = vld [vmem:[#allocation2 + $0x20] sm:$0xff]  ;;  %v304_v29 = vld [vmem:[#allocation2 + $0xa8] sm:$0xff] }
  0x90   : > { %v289_v38 = vld [vmem:[#allocation2 + $0x30] sm:$0xff]  ;;  %v306_v41 = vld [vmem:[#allocation2 + $0xb8] sm:$0xff] }
  0x91   : > { %3255 = vmatpush1.bf16.msra.mxu0 %v3254_v27  ;;  %3283 = vmatpush1.bf16.msra.mxu1 %v3254_v27  ;;  %v303_v27 = vld [vmem:[#allocation2 + $0xa0] sm:$0xff] }
  0x92   : > { %3257 = vmatprep.subr.bf16.mxu0 %v3256_v28  ;;  %3276 = vmatprep.subr.bf16.mxu1 %v3256_v28  ;;  %v288_v28 = vld [vmem:[#allocation2 + $0x28] sm:$0xff] }
  0x95   : > { %3259 = vmatpush1.bf16.msra.mxu0 %v3258_v33  ;;  %3284 = vmatpush1.bf16.msra.mxu1 %v3258_v33 }
  0x96   : > { %3261 = vmatprep.subr.bf16.mxu0 %v3260_v34  ;;  %3277 = vmatprep.subr.bf16.mxu1 %v3260_v34 }
  0x99   : > { %3263 = vmatpush1.bf16.msra.mxu0 %v3262_v39  ;;  %3285 = vmatpush1.bf16.msra.mxu1 %v3262_v39  ;;  %v305_v39 = vld [vmem:[#allocation2 + $0xb0] sm:$0xff] }
  0x9a   : > { %3265 = vmatprep.subr.bf16.mxu0 %v3264_v40  ;;  %3278 = vmatprep.subr.bf16.mxu1 %v3264_v40  ;;  %v290_v40 = vld [vmem:[#allocation2 + $0x38] sm:$0xff] }
  0x9d   : > { %3267 = vmatpush1.bf16.msra.mxu0 %v3266_v45  ;;  %3286 = vmatpush1.bf16.msra.mxu1 %v3266_v45 }
  0x9e   : > { %3269 = vmatprep.subr.bf16.mxu0 %v3268_v46  ;;  %3279 = vmatprep.subr.bf16.mxu1 %v3268_v46 }
  0xa1   : > { %3271 = vmatpush1.bf16.msra.mxu0 %v3270_v49  ;;  %3287 = vmatpush1.bf16.msra.mxu1 %v3270_v49 }
  0xa4   : > { %396 = vmatmul.mubr.f32.vlgmr.msra.gmra.mrb[0].mxu0 %v315_v50  ;;  %444 = vmatmul.mubr.f32.vlgmr.msra.gmra.mrb[0].mxu1 %v323_v51  ;;  %v291_v50 = vld [vmem:[#allocation2 + $0x40] sm:$0xff] }
  0xa5   : > { %401 = vmatprep.mubr.f32.mxu0 %v3638_v1  ;;  %449 = vmatprep.mubr.f32.mxu1 %v3638_v1  ;;  %v307_v51 = vld [vmem:[#allocation2 + $0xc0] sm:$0xff] }
  0xa8   : > { %402 = vmatmul.mubr.f32.gmra.mrb[2].mxu0 %v316_v52  ;;  %450 = vmatmul.mubr.f32.gmra.mrb[2].mxu1 %v324_v53  ;;  %v292_v52 = vld [vmem:[#allocation2 + $0x48] sm:$0xff] }
  0xa9   : > { %407 = vmatprep.mubr.f32.mxu0 %v3638_v1  ;;  %455 = vmatprep.mubr.f32.mxu1 %v3638_v1  ;;  %v308_v53 = vld [vmem:[#allocation2 + $0xc8] sm:$0xff] }
  0xac   : > { %408 = vmatmul.mubr.f32.gmra.mrb[4].mxu0 %v317_v54  ;;  %456 = vmatmul.mubr.f32.gmra.mrb[4].mxu1 %v325_v55 }
  0xad   : > { %413 = vmatprep.mubr.f32.mxu0 %v3638_v1  ;;  %461 = vmatprep.mubr.f32.mxu1 %v3638_v1 }
  0xb0   : > { %414 = vmatmul.mubr.f32.gmra.mrb[6].mxu0 %v318_v56  ;;  %462 = vmatmul.mubr.f32.gmra.mrb[6].mxu1 %v326_v57 }
  0xb1   : > { %419 = vmatprep.mubr.f32.mxu0 %v3638_v1  ;;  %467 = vmatprep.mubr.f32.mxu1 %v3638_v1 }
  0xb4   : > { %420 = vmatmul.mubr.f32.gmra.mrb[8].mxu0 %v319_v58  ;;  %468 = vmatmul.mubr.f32.gmra.mrb[8].mxu1 %v327_v59 }
  0xb5   : > { %425 = vmatprep.mubr.f32.mxu0 %v3638_v1  ;;  %473 = vmatprep.mubr.f32.mxu1 %v3638_v1 }
  0xb8   : > { %426 = vmatmul.mubr.f32.gmra.mrb[10].mxu0 %v320_v60  ;;  %474 = vmatmul.mubr.f32.gmra.mrb[10].mxu1 %v328_v61 }
  0xb9   : > { %431 = vmatprep.mubr.f32.mxu0 %v3638_v1  ;;  %479 = vmatprep.mubr.f32.mxu1 %v3638_v1 }
  0xbc   : > { %432 = vmatmul.mubr.f32.gmra.mrb[12].mxu0 %v321_v62  ;;  %480 = vmatmul.mubr.f32.gmra.mrb[12].mxu1 %v329_v63  ;;  %v293_v62 = vld [vmem:[#allocation2 + $0x50] sm:$0xff] }
  0xbd   : > { %437 = vmatprep.mubr.f32.mxu0 %v3638_v1  ;;  %485 = vmatprep.mubr.f32.mxu1 %v3638_v1  ;;  %v286_v1 = vld [vmem:[#allocation2 + $0x18] sm:$0xff]  ;;  %v309_v63 = vld [vmem:[#allocation2 + $0xd0] sm:$0xff] }
  0xc0   : > { %438 = vmatmul.mubr.f32.gmra.mrb[14].mxu0 %v322_v0  ;;  %486 = vmatmul.mubr.f32.gmra.mrb[14].mxu1 %v330_v2  ;;  %v294_v0 = vld [vmem:[#allocation2 + $0x58] sm:$0xff] }
  0xc1   : > { %v310_v2 = vld [vmem:[#allocation2 + $0xd8] sm:$0xff] }
 0x177   : > { %v397_v7 = vpop.f32.mrb[0].mxu0  ;;  %v445_v8 = vpop.f32.mrb[0].mxu1 }
 0x178   : > { %v492_v9 = vadd.f32 %v397_v7, %v283_v3  ;;  %v508_v10 = vadd.f32 %v445_v8, %v299_v4  ;;  %v399_v11 = vpop.f32.mrb[1].mxu0  ;;  %v447_v12 = vpop.f32.mrb[1].mxu1 }
 0x179   : > { %v493_v13 = vadd.f32 %v399_v11, %v284_v5  ;;  %v509_v14 = vadd.f32 %v447_v12, %v300_v6  ;;  %v295_v11 = vld [vmem:[#allocation2 + $0x60] sm:$0xff] }
 0x17a   : > { %524 = vst [vmem:[#allocation2] sm:$0xff] %v492_v9  ;;  %540 = vst [vmem:[#allocation2 + $0x80] sm:$0xff] %v508_v10  ;;  %v311_v12 = vld [vmem:[#allocation2 + $0xe0] sm:$0xff] }
 0x17b   : > { %525 = vst [vmem:[#allocation2 + $0x8] sm:$0xff] %v493_v13  ;;  %541 = vst [vmem:[#allocation2 + $0x88] sm:$0xff] %v509_v14  ;;  %v403_v18 = vpop.f32.mrb[2].mxu0  ;;  %v451_v19 = vpop.f32.mrb[2].mxu1  ;;  %v296_v13 = vld [vmem:[#allocation2 + $0x68] sm:$0xff] }
 0x17c   : > { %v494_v20 = vadd.f32 %v403_v18, %v285_v15  ;;  %v510_v21 = vadd.f32 %v451_v19, %v301_v16  ;;  %v405_v22 = vpop.f32.mrb[3].mxu0  ;;  %v453_v23 = vpop.f32.mrb[3].mxu1  ;;  %v312_v14 = vld [vmem:[#allocation2 + $0xe8] sm:$0xff] }
 0x17d   : > { %v495_v24 = vadd.f32 %v405_v22, %v286_v1  ;;  %v511_v25 = vadd.f32 %v453_v23, %v302_v17  ;;  %v297_v22 = vld [vmem:[#allocation2 + $0x70] sm:$0xff] }
 0x17e   : > { %526 = vst [vmem:[#allocation2 + $0x10] sm:$0xff] %v494_v20  ;;  %542 = vst [vmem:[#allocation2 + $0x90] sm:$0xff] %v510_v21  ;;  %v313_v23 = vld [vmem:[#allocation2 + $0xf0] sm:$0xff] }
 0x17f   : > { %527 = vst [vmem:[#allocation2 + $0x18] sm:$0xff] %v495_v24  ;;  %543 = vst [vmem:[#allocation2 + $0x98] sm:$0xff] %v511_v25  ;;  %v409_v30 = vpop.f32.mrb[4].mxu0  ;;  %v457_v31 = vpop.f32.mrb[4].mxu1  ;;  %v298_v24 = vld [vmem:[#allocation2 + $0x78] sm:$0xff] }
 0x180   : > { %v496_v32 = vadd.f32 %v409_v30, %v287_v26  ;;  %v512_v33 = vadd.f32 %v457_v31, %v303_v27  ;;  %v411_v34 = vpop.f32.mrb[5].mxu0  ;;  %v459_v35 = vpop.f32.mrb[5].mxu1  ;;  %v314_v25 = vld [vmem:[#allocation2 + $0xf8] sm:$0xff] }
 0x181   : > { %v497_v36 = vadd.f32 %v411_v34, %v288_v28  ;;  %v513_v37 = vadd.f32 %v459_v35, %v304_v29  ;;  %v560_v34 = vld [vmem:[#allocation2] sm:$0xff] (!%p2719_p4) }
 0x182   : > { %528 = vst [vmem:[#allocation2 + $0x20] sm:$0xff] %v496_v32  ;;  %544 = vst [vmem:[#allocation2 + $0xa0] sm:$0xff] %v512_v33  ;;  %v561_v35 = vld [vmem:[#allocation2 + $0x8] sm:$0xff] (!%p2719_p4) }
 0x183   : > { %529 = vst [vmem:[#allocation2 + $0x28] sm:$0xff] %v497_v36  ;;  %545 = vst [vmem:[#allocation2 + $0xa8] sm:$0xff] %v513_v37  ;;  %v415_v42 = vpop.f32.mrb[6].mxu0  ;;  %v463_v43 = vpop.f32.mrb[6].mxu1  ;;  %v629_v36 = vlaneseq (!%p2719_p4)  ;;  %v3412_v37 = vld [vmem:[#allocation2] ss:$8 sps:$4 sm:$0xff] (!%p2719_p4)  }
 0x184   : > { %v498_v44 = vadd.f32 %v415_v42, %v289_v38  ;;  %v514_v45 = vadd.f32 %v463_v43, %v305_v39  ;;  %v417_v46 = vpop.f32.mrb[7].mxu0  ;;  %v465_v47 = vpop.f32.mrb[7].mxu1  ;;  %v3639_v38 = vmov (!%p2719_p4), 1966171168  }
 0x185   : > { %v499_v48 = vadd.f32 %v417_v46, %v290_v40  ;;  %v515_v49 = vadd.f32 %v465_v47, %v306_v41  ;;  %v627_v39 = vunpack.c.l.s4 (!%p2719_p4), %v3639_v38  ;;  %v562_v40 = vld [vmem:[#allocation2 + $0x10] sm:$0xff] (!%p2719_p4)  ;;  %v630_v42 = vshrl.u32 (!%p2719_p4), %v629_v36, 7 }
 0x186   : > { %530 = vst [vmem:[#allocation2 + $0x30] sm:$0xff] %v498_v44  ;;  %546 = vst [vmem:[#allocation2 + $0xb0] sm:$0xff] %v514_v45  ;;  %v563_v41 = vld [vmem:[#allocation2 + $0x18] sm:$0xff] (!%p2719_p4)  ;;  %v625_v47 = vcombine.high (!%p2719_p4), %v560_v34, %v561_v35  ;;  %vm3938_vm0 = vcmp.lt.s32.totalorder (!%p2719_p4), %v629_v36, 256 }
 0x187   : > { %531 = vst [vmem:[#allocation2 + $0x38] sm:$0xff] %v499_v48  ;;  %547 = vst [vmem:[#allocation2 + $0xb8] sm:$0xff] %v515_v49  ;;  %v421_v54 = vpop.f32.mrb[8].mxu0  ;;  %v469_v55 = vpop.f32.mrb[8].mxu1  ;;  %v3414_v43 = vld [vmem:[#allocation2 + $0x10] ss:$8 sps:$4 sm:$0xff] (!%p2719_p4)   ;;  %v628_v46 = vunpack.c.0.s8 (!%p2719_p4), %v627_v39  ;;  %v675_v48 = vcombine.high (!%p2719_p4), %v562_v40, %v563_v41 }
 0x188   : > { %v500_v56 = vadd.f32 %v421_v54, %v291_v50  ;;  %v516_v57 = vadd.f32 %v469_v55, %v307_v51  ;;  %v423_v58 = vpop.f32.mrb[9].mxu0  ;;  %v471_v59 = vpop.f32.mrb[9].mxu1 }
 0x189   : > { %v501_v60 = vadd.f32 %v423_v58, %v292_v52  ;;  %v517_v61 = vadd.f32 %v471_v59, %v308_v53  ;;  %v564_v44 = vld [vmem:[#allocation2 + $0x20] sm:$0xff] (!%p2719_p4) }
 0x18a   : > { %532 = vst [vmem:[#allocation2 + $0x40] sm:$0xff] %v500_v56  ;;  %548 = vst [vmem:[#allocation2 + $0xc0] sm:$0xff] %v516_v57  ;;  %v565_v45 = vld [vmem:[#allocation2 + $0x28] sm:$0xff] (!%p2719_p4)  ;;  %v3932_v57 = vsub.s32 (!%p2719_p4), %v628_v46, %v630_v42 }
 0x18b   : > { %533 = vst [vmem:[#allocation2 + $0x48] sm:$0xff] %v501_v60  ;;  %549 = vst [vmem:[#allocation2 + $0xc8] sm:$0xff] %v517_v61  ;;  %v427_v3 = vpop.f32.mrb[10].mxu0  ;;  %v475_v4 = vpop.f32.mrb[10].mxu1  ;;  %v3416_v49 = vld [vmem:[#allocation2 + $0x20] ss:$8 sps:$4 sm:$0xff] (!%p2719_p4)   ;;  %v725_v52 = vcombine.high (!%p2719_p4), %v564_v44, %v565_v45 }
 0x18c   : > { %v502_v5 = vadd.f32 %v427_v3, %v293_v62  ;;  %v518_v6 = vadd.f32 %v475_v4, %v309_v63  ;;  %v429_v7 = vpop.f32.mrb[11].mxu0  ;;  %v477_v8 = vpop.f32.mrb[11].mxu1  ;;  %v632_v63 = vrot.slane (!%p2719_p4), %v3412_v37, %v3932_v57  ;;  %v689_v3 = vrot.slane (!%p2719_p4), %v675_v48, %v3932_v57 }
 0x18d   : > { %v503_v9 = vadd.f32 %v429_v7, %v294_v0  ;;  %v519_v10 = vadd.f32 %v477_v8, %v310_v2  ;;  %v566_v50 = vld [vmem:[#allocation2 + $0x30] sm:$0xff] (!%p2719_p4)  ;;  %v639_v0 = vrot.slane (!%p2719_p4), %v625_v47, %v3932_v57  ;;  %v682_v2 = vrot.slane (!%p2719_p4), %v3414_v43, %v3932_v57 }
 0x18e   : > { %534 = vst [vmem:[#allocation2 + $0x50] sm:$0xff] %v502_v5  ;;  %550 = vst [vmem:[#allocation2 + $0xd0] sm:$0xff] %v518_v6  ;;  %v567_v51 = vld [vmem:[#allocation2 + $0x38] sm:$0xff] (!%p2719_p4)  ;;  %v3951_v4 = vrot.slane (!%p2719_p4), %v3416_v49, %v3932_v57  ;;  %v3954_v5 = vrot.slane (!%p2719_p4), %v725_v52, %v3932_v57  ;;  %v648_v8 = vrot.slane (!%p2719_p4), %v632_v63, %v3932_v57 }
 0x18f   : > { %535 = vst [vmem:[#allocation2 + $0x58] sm:$0xff] %v503_v9  ;;  %551 = vst [vmem:[#allocation2 + $0xd8] sm:$0xff] %v519_v10  ;;  %v433_v15 = vpop.f32.mrb[12].mxu0  ;;  %v481_v16 = vpop.f32.mrb[12].mxu1  ;;  %v3418_v53 = vld [vmem:[#allocation2 + $0x30] ss:$8 sps:$4 sm:$0xff] (!%p2719_p4)   ;;  %v775_v54 = vcombine.high (!%p2719_p4), %v566_v50, %v567_v51  ;;  %v640_v9 = vcombine.high (!%p2719_p4), %v632_v63, %v632_v63  ;;  %v655_v10 = vrot.slane (!%p2719_p4), %v639_v0, %v3932_v57 }
 0x190   : > { %v504_v1 = vadd.f32 %v433_v15, %v295_v11  ;;  %v520_v17 = vadd.f32 %v481_v16, %v311_v12  ;;  %v435_v18 = vpop.f32.mrb[13].mxu0  ;;  %v483_v19 = vpop.f32.mrb[13].mxu1  ;;  %v3957_v6 = vrot.slane (!%p2719_p4), %v3418_v53, %v3932_v57  ;;  %v641_v11 = vcombine.high (!%p2719_p4), %v639_v0, %v639_v0  ;;  %1556 = vst.msk [vmem:[%s3857_s20] ss:$4 sm:$0x3] (!%p2719_p4), %vm3938_vm0, %v648_v8 }
 0x191   : > { %v505_v20 = vadd.f32 %v435_v18, %v296_v13  ;;  %v521_v21 = vadd.f32 %v483_v19, %v312_v14  ;;  %559 = sbr.rel (%p2719_p4) target bundleno = 669 (0x29d), region = 44  ;;  %v3928_v55 = vld [vmem:[#allocation2 + $0x40] sm:$0xff] (!%p2719_p4)  ;;  %v3960_v7 = vrot.slane (!%p2719_p4), %v775_v54, %v3932_v57  ;;  %v698_v12 = vrot.slane (!%p2719_p4), %v682_v2, %v3932_v57  ;;  %2847 = vst.msk [vmem:[%s3857_s20 + $0x1] ss:$4 sm:$0x3] (!%p2719_p4), %vm3938_vm0, %v648_v8 }
 0x192   : > { %536 = vst [vmem:[#allocation2 + $0x60] sm:$0xff] %v504_v1  ;;  %552 = vst [vmem:[#allocation2 + $0xe0] sm:$0xff] %v520_v17  ;;  %v3930_v56 = vld [vmem:[#allocation2 + $0x48] sm:$0xff] (!%p2719_p4)  ;;  %v690_v13 = vcombine.high (!%p2719_p4), %v682_v2, %v682_v2  ;;  %v705_v14 = vrot.slane (!%p2719_p4), %v689_v3, %v3932_v57  ;;  %v691_v15 = vcombine.high (!%p2719_p4), %v689_v3, %v689_v3 }
 0x193   : > { %537 = vst [vmem:[#allocation2 + $0x68] sm:$0xff] %v505_v20  ;;  %553 = vst [vmem:[#allocation2 + $0xe8] sm:$0xff] %v521_v21  ;;  %v439_v26 = vpop.f32.mrb[14].mxu0  ;;  %v487_v27 = vpop.f32.mrb[14].mxu1  ;;  %v825_v61 = vcombine.high (!%p2719_p4), %v3928_v55, %v3930_v56  ;;  %v662_v16 = vrot.slane (!%p2719_p4), %v640_v9, %v3932_v57  ;;  %v670_v1 = vcombine.high (!%p2719_p4), %v648_v8, %v648_v8 }
 0x194   : > { %v506_v28 = vadd.f32 %v439_v26, %v297_v22  ;;  %v522_v29 = vadd.f32 %v487_v27, %v313_v23  ;;  %v441_v30 = vpop.f32.mrb[15].mxu0  ;;  %v489_v31 = vpop.f32.mrb[15].mxu1  ;;  %2975 = vst.msk [vmem:[%s3857_s20 + $0x2] ss:$4 sm:$0x3] (!%p2719_p4), %vm3938_vm0, %v648_v8  ;;  %v669_v17 = vrot.slane (!%p2719_p4), %v641_v11, %v3932_v57  ;;  %v671_v18 = vcombine.high (!%p2719_p4), %v655_v10, %v655_v10 }
 0x195   : > { %v507_v32 = vadd.f32 %v441_v30, %v298_v24  ;;  %v523_v33 = vadd.f32 %v489_v31, %v314_v25  ;;  %v3934_v58 = vld [vmem:[#allocation2 + $0x50] sm:$0xff] (!%p2719_p4)  ;;  %3103 = vst.msk [vmem:[%s3857_s20 + $0x3] ss:$4 sm:$0x3] (!%p2719_p4), %vm3938_vm0, %v648_v8  ;;  %v712_v19 = vrot.slane (!%p2719_p4), %v690_v13, %v3932_v57  ;;  %v720_v20 = vcombine.high (!%p2719_p4), %v698_v12, %v698_v12  ;;  %v4070_v27 = vld [vmem:[#allocation2 + $0x40] ss:$8 sps:$4 sm:$0xff] (!%p2719_p4)  }
 0x196   : > { %538 = vst [vmem:[#allocation2 + $0x70] sm:$0xff] %v506_v28  ;;  %554 = vst [vmem:[#allocation2 + $0xf0] sm:$0xff] %v522_v29  ;;  %v3936_v59 = vld [vmem:[#allocation2 + $0x58] sm:$0xff] (!%p2719_p4)  ;;  %v719_v21 = vrot.slane (!%p2719_p4), %v691_v15, %v3932_v57  ;;  %v721_v22 = vcombine.high (!%p2719_p4), %v705_v14, %v705_v14  ;;  %v672_v23 = vcombine.high (!%p2719_p4), %v662_v16, %v662_v16  ;;  %v4426_v8 = vld [vmem:[#allocation2 + $0x80] ss:$8 sps:$4 sm:$0xff] (!%p2719_p4)  }
 0x197   : > { %539 = vst [vmem:[#allocation2 + $0x78] sm:$0xff] %v507_v32  ;;  %555 = vst [vmem:[#allocation2 + $0xf8] sm:$0xff] %v523_v33  ;;  %v875_v62 = vcombine.high (!%p2719_p4), %v3934_v58, %v3936_v59  ;;  %v673_v24 = vcombine.high (!%p2719_p4), %v669_v17, %v669_v17  ;;  %v748_v25 = vrot.slane (!%p2719_p4), %v3951_v4, %v3932_v57  ;;  %v4165_v36 = vld [vmem:[#allocation2 + $0x50] ss:$8 sps:$4 sm:$0xff] (!%p2719_p4)  }
 0x198   : > { %2723 = vst.msk [vmem:[%s3857_s20 + $0x20] ss:$4 sm:$0x3] %vm3938_vm0, %v655_v10  ;;  %2851 = vst.msk [vmem:[%s3857_s20 + $0x21] ss:$4 sm:$0x3] %vm3938_vm0, %v655_v10  ;;  %v740_v26 = vcombine.high %v3951_v4, %v3951_v4  ;;  %v722_v28 = vcombine.high %v712_v19, %v712_v19  ;;  %v723_v29 = vcombine.high %v719_v21, %v719_v21 }
 0x199   : > { %2979 = vst.msk [vmem:[%s3857_s20 + $0x22] ss:$4 sm:$0x3] %vm3938_vm0, %v655_v10  ;;  %3107 = vst.msk [vmem:[%s3857_s20 + $0x23] ss:$4 sm:$0x3] %vm3938_vm0, %v655_v10  ;;  %v755_v30 = vrot.slane %v3954_v5, %v3932_v57  ;;  %v741_v31 = vcombine.high %v3954_v5, %v3954_v5  ;;  %v770_v33 = vcombine.high %v748_v25, %v748_v25 }
 0x19a   : > { %2727 = vst.msk [vmem:[%s3857_s20 + $0x40] ss:$4 sm:$0x3] %vm3938_vm0, %v698_v12  ;;  %2855 = vst.msk [vmem:[%s3857_s20 + $0x41] ss:$4 sm:$0x3] %vm3938_vm0, %v698_v12  ;;  %v762_v32 = vrot.slane %v740_v26, %v3932_v57  ;;  %v798_v34 = vrot.slane %v3957_v6, %v3932_v57  ;;  %v790_v35 = vcombine.high %v3957_v6, %v3957_v6 }
 0x19b   : > { %2983 = vst.msk [vmem:[%s3857_s20 + $0x42] ss:$4 sm:$0x3] %vm3938_vm0, %v698_v12  ;;  %3111 = vst.msk [vmem:[%s3857_s20 + $0x43] ss:$4 sm:$0x3] %vm3938_vm0, %v698_v12  ;;  %v769_v37 = vrot.slane %v741_v31, %v3932_v57  ;;  %v771_v38 = vcombine.high %v755_v30, %v755_v30  ;;  %v805_v39 = vrot.slane %v3960_v7, %v3932_v57 }
 0x19c   : > { %2731 = vst.msk [vmem:[%s3857_s20 + $0x60] ss:$4 sm:$0x3] %vm3938_vm0, %v705_v14  ;;  %2859 = vst.msk [vmem:[%s3857_s20 + $0x61] ss:$4 sm:$0x3] %vm3938_vm0, %v705_v14  ;;  %v791_v40 = vcombine.high %v3960_v7, %v3960_v7  ;;  %v772_v41 = vcombine.high %v762_v32, %v762_v32  ;;  %v812_v42 = vrot.slane %v790_v35, %v3932_v57 }
 0x19d   : > { %2987 = vst.msk [vmem:[%s3857_s20 + $0x62] ss:$4 sm:$0x3] %vm3938_vm0, %v705_v14  ;;  %3115 = vst.msk [vmem:[%s3857_s20 + $0x63] ss:$4 sm:$0x3] %vm3938_vm0, %v705_v14  ;;  %v820_v43 = vcombine.high %v798_v34, %v798_v34  ;;  %v832_v44 = vrot.slane %v4070_v27, %v3932_v57  ;;  %v773_v45 = vcombine.high %v769_v37, %v769_v37 }
 0x19e   : > { %2720 = vst.msk [vmem:[%s3857_s20 + $0x8] ss:$4 sm:$0x3] %vm3938_vm0, %v662_v16  ;;  %2848 = vst.msk [vmem:[%s3857_s20 + $0x9] ss:$4 sm:$0x3] %vm3938_vm0, %v662_v16  ;;  %v819_v46 = vrot.slane %v791_v40, %v3932_v57  ;;  %v821_v47 = vcombine.high %v805_v39, %v805_v39  ;;  %v839_v48 = vrot.slane %v825_v61, %v3932_v57 }
 0x19f   : > { %2976 = vst.msk [vmem:[%s3857_s20 + $0xa] ss:$4 sm:$0x3] %vm3938_vm0, %v662_v16  ;;  %3104 = vst.msk [vmem:[%s3857_s20 + $0xb] ss:$4 sm:$0x3] %vm3938_vm0, %v662_v16  ;;  %v822_v49 = vcombine.high %v812_v42, %v812_v42  ;;  %v848_v50 = vrot.slane %v832_v44, %v3932_v57  ;;  %v840_v51 = vcombine.high %v832_v44, %v832_v44 }
 0x1a0   : > { %2721 = vst.msk [vmem:[%s3857_s20 + $0x10] ss:$4 sm:$0x3] %vm3938_vm0, %v670_v1  ;;  %2849 = vst.msk [vmem:[%s3857_s20 + $0x11] ss:$4 sm:$0x3] %vm3938_vm0, %v670_v1  ;;  %v882_v52 = vrot.slane %v4165_v36, %v3932_v57  ;;  %v823_v54 = vcombine.high %v819_v46, %v819_v46  ;;  %v855_v55 = vrot.slane %v839_v48, %v3932_v57 }
 0x1a1   : > { %2977 = vst.msk [vmem:[%s3857_s20 + $0x12] ss:$4 sm:$0x3] %vm3938_vm0, %v670_v1  ;;  %3105 = vst.msk [vmem:[%s3857_s20 + $0x13] ss:$4 sm:$0x3] %vm3938_vm0, %v670_v1  ;;  %v841_v56 = vcombine.high %v839_v48, %v839_v48  ;;  %v889_v61 = vrot.slane %v875_v62, %v3932_v57  ;;  %v862_v58 = vrot.slane %v840_v51, %v3932_v57 }
 0x1a2   : > { %2724 = vst.msk [vmem:[%s3857_s20 + $0x28] ss:$4 sm:$0x3] %vm3938_vm0, %v669_v17  ;;  %2852 = vst.msk [vmem:[%s3857_s20 + $0x29] ss:$4 sm:$0x3] %vm3938_vm0, %v669_v17  ;;  %v870_v59 = vcombine.high %v848_v50, %v848_v50  ;;  %v898_v62 = vrot.slane %v882_v52, %v3932_v57  ;;  %v890_v63 = vcombine.high %v882_v52, %v882_v52 }
 0x1a3   : > { %2980 = vst.msk [vmem:[%s3857_s20 + $0x2a] ss:$4 sm:$0x3] %vm3938_vm0, %v669_v17  ;;  %3108 = vst.msk [vmem:[%s3857_s20 + $0x2b] ss:$4 sm:$0x3] %vm3938_vm0, %v669_v17  ;;  %v869_v4 = vrot.slane %v841_v56, %v3932_v57  ;;  %v871_v5 = vcombine.high %v855_v55, %v855_v55  ;;  %v905_v6 = vrot.slane %v889_v61, %v3932_v57 }
 0x1a4   : > { %2725 = vst.msk [vmem:[%s3857_s20 + $0x30] ss:$4 sm:$0x3] %vm3938_vm0, %v671_v18  ;;  %2853 = vst.msk [vmem:[%s3857_s20 + $0x31] ss:$4 sm:$0x3] %vm3938_vm0, %v671_v18  ;;  %v891_v7 = vcombine.high %v889_v61, %v889_v61  ;;  %v872_v9 = vcombine.high %v862_v58, %v862_v58  ;;  %v912_v10 = vrot.slane %v890_v63, %v3932_v57 }
 0x1a5   : > { %2981 = vst.msk [vmem:[%s3857_s20 + $0x32] ss:$4 sm:$0x3] %vm3938_vm0, %v671_v18  ;;  %3109 = vst.msk [vmem:[%s3857_s20 + $0x33] ss:$4 sm:$0x3] %vm3938_vm0, %v671_v18  ;;  %v920_v11 = vcombine.high %v898_v62, %v898_v62  ;;  %v873_v15 = vcombine.high %v869_v4, %v869_v4  ;;  %v921_v1 = vcombine.high %v905_v6, %v905_v6 }
 0x1a6   : > { %2728 = vst.msk [vmem:[%s3857_s20 + $0x48] ss:$4 sm:$0x3] %vm3938_vm0, %v712_v19  ;;  %2856 = vst.msk [vmem:[%s3857_s20 + $0x49] ss:$4 sm:$0x3] %vm3938_vm0, %v712_v19  ;;  %v919_v16 = vrot.slane %v891_v7, %v3932_v57  ;;  %v922_v18 = vcombine.high %v912_v10, %v912_v10 }
 0x1a7   : > { %2984 = vst.msk [vmem:[%s3857_s20 + $0x4a] ss:$4 sm:$0x3] %vm3938_vm0, %v712_v19  ;;  %3112 = vst.msk [vmem:[%s3857_s20 + $0x4b] ss:$4 sm:$0x3] %vm3938_vm0, %v712_v19 }
 0x1a8   : > { %2729 = vst.msk [vmem:[%s3857_s20 + $0x50] ss:$4 sm:$0x3] %vm3938_vm0, %v720_v20  ;;  %2857 = vst.msk [vmem:[%s3857_s20 + $0x51] ss:$4 sm:$0x3] %vm3938_vm0, %v720_v20 }
 0x1a9   : > { %2985 = vst.msk [vmem:[%s3857_s20 + $0x52] ss:$4 sm:$0x3] %vm3938_vm0, %v720_v20  ;;  %3113 = vst.msk [vmem:[%s3857_s20 + $0x53] ss:$4 sm:$0x3] %vm3938_vm0, %v720_v20 }
 0x1aa   : > { %2732 = vst.msk [vmem:[%s3857_s20 + $0x68] ss:$4 sm:$0x3] %vm3938_vm0, %v719_v21  ;;  %2860 = vst.msk [vmem:[%s3857_s20 + $0x69] ss:$4 sm:$0x3] %vm3938_vm0, %v719_v21 }
 0x1ab   : > { %2988 = vst.msk [vmem:[%s3857_s20 + $0x6a] ss:$4 sm:$0x3] %vm3938_vm0, %v719_v21  ;;  %3116 = vst.msk [vmem:[%s3857_s20 + $0x6b] ss:$4 sm:$0x3] %vm3938_vm0, %v719_v21 }
 0x1ac   : > { %2733 = vst.msk [vmem:[%s3857_s20 + $0x70] ss:$4 sm:$0x3] %vm3938_vm0, %v721_v22  ;;  %2861 = vst.msk [vmem:[%s3857_s20 + $0x71] ss:$4 sm:$0x3] %vm3938_vm0, %v721_v22 }
 0x1ad   : > { %2989 = vst.msk [vmem:[%s3857_s20 + $0x72] ss:$4 sm:$0x3] %vm3938_vm0, %v721_v22  ;;  %3117 = vst.msk [vmem:[%s3857_s20 + $0x73] ss:$4 sm:$0x3] %vm3938_vm0, %v721_v22  ;;  %v923_v22 = vcombine.high %v919_v16, %v919_v16 }
 0x1ae   : > { %2722 = vst.msk [vmem:[%s3857_s20 + $0x18] ss:$4 sm:$0x3] %vm3938_vm0, %v672_v23  ;;  %2850 = vst.msk [vmem:[%s3857_s20 + $0x19] ss:$4 sm:$0x3] %vm3938_vm0, %v672_v23 }
 0x1af   : > { %2978 = vst.msk [vmem:[%s3857_s20 + $0x1a] ss:$4 sm:$0x3] %vm3938_vm0, %v672_v23  ;;  %3106 = vst.msk [vmem:[%s3857_s20 + $0x1b] ss:$4 sm:$0x3] %vm3938_vm0, %v672_v23 }
 0x1b0   : > { %2726 = vst.msk [vmem:[%s3857_s20 + $0x38] ss:$4 sm:$0x3] %vm3938_vm0, %v673_v24  ;;  %2854 = vst.msk [vmem:[%s3857_s20 + $0x39] ss:$4 sm:$0x3] %vm3938_vm0, %v673_v24 }
 0x1b1   : > { %2982 = vst.msk [vmem:[%s3857_s20 + $0x3a] ss:$4 sm:$0x3] %vm3938_vm0, %v673_v24  ;;  %3110 = vst.msk [vmem:[%s3857_s20 + $0x3b] ss:$4 sm:$0x3] %vm3938_vm0, %v673_v24 }
 0x1b2   : > { %2735 = vst.msk [vmem:[%s3857_s20 + $0x80] ss:$4 sm:$0x3] %vm3938_vm0, %v748_v25  ;;  %2863 = vst.msk [vmem:[%s3857_s20 + $0x81] ss:$4 sm:$0x3] %vm3938_vm0, %v748_v25 }
 0x1b3   : > { %2991 = vst.msk [vmem:[%s3857_s20 + $0x82] ss:$4 sm:$0x3] %vm3938_vm0, %v748_v25  ;;  %3119 = vst.msk [vmem:[%s3857_s20 + $0x83] ss:$4 sm:$0x3] %vm3938_vm0, %v748_v25  ;;  %v4589_v25 = vrot.slane %v4426_v8, %v3932_v57 }
 0x1b4   : > { %2730 = vst.msk [vmem:[%s3857_s20 + $0x58] ss:$4 sm:$0x3] %vm3938_vm0, %v722_v28  ;;  %2858 = vst.msk [vmem:[%s3857_s20 + $0x59] ss:$4 sm:$0x3] %vm3938_vm0, %v722_v28 }
 0x1b5   : > { %2986 = vst.msk [vmem:[%s3857_s20 + $0x5a] ss:$4 sm:$0x3] %vm3938_vm0, %v722_v28  ;;  %3114 = vst.msk [vmem:[%s3857_s20 + $0x5b] ss:$4 sm:$0x3] %vm3938_vm0, %v722_v28  ;;  %v1048_v35 = vrot.slane %v4589_v25, %v3932_v57  ;;  %v1040_v40 = vcombine.high %v4589_v25, %v4589_v25 }
 0x1b6   : > { %2734 = vst.msk [vmem:[%s3857_s20 + $0x78] ss:$4 sm:$0x3] %vm3938_vm0, %v723_v29  ;;  %2862 = vst.msk [vmem:[%s3857_s20 + $0x79] ss:$4 sm:$0x3] %vm3938_vm0, %v723_v29 }
 0x1b7   : > { %2990 = vst.msk [vmem:[%s3857_s20 + $0x7a] ss:$4 sm:$0x3] %vm3938_vm0, %v723_v29  ;;  %3118 = vst.msk [vmem:[%s3857_s20 + $0x7b] ss:$4 sm:$0x3] %vm3938_vm0, %v723_v29 }
 0x1b8   : > { %2739 = vst.msk [vmem:[%s3857_s20 + $0xa0] ss:$4 sm:$0x3] %vm3938_vm0, %v755_v30  ;;  %2867 = vst.msk [vmem:[%s3857_s20 + $0xa1] ss:$4 sm:$0x3] %vm3938_vm0, %v755_v30 }
 0x1b9   : > { %2995 = vst.msk [vmem:[%s3857_s20 + $0xa2] ss:$4 sm:$0x3] %vm3938_vm0, %v755_v30  ;;  %3123 = vst.msk [vmem:[%s3857_s20 + $0xa3] ss:$4 sm:$0x3] %vm3938_vm0, %v755_v30 }
 0x1ba   : > { %2736 = vst.msk [vmem:[%s3857_s20 + $0x88] ss:$4 sm:$0x3] %vm3938_vm0, %v762_v32  ;;  %2864 = vst.msk [vmem:[%s3857_s20 + $0x89] ss:$4 sm:$0x3] %vm3938_vm0, %v762_v32 }
 0x1bb   : > { %2992 = vst.msk [vmem:[%s3857_s20 + $0x8a] ss:$4 sm:$0x3] %vm3938_vm0, %v762_v32  ;;  %3120 = vst.msk [vmem:[%s3857_s20 + $0x8b] ss:$4 sm:$0x3] %vm3938_vm0, %v762_v32 }
 0x1bc   : > { %2737 = vst.msk [vmem:[%s3857_s20 + $0x90] ss:$4 sm:$0x3] %vm3938_vm0, %v770_v33  ;;  %2865 = vst.msk [vmem:[%s3857_s20 + $0x91] ss:$4 sm:$0x3] %vm3938_vm0, %v770_v33 }
 0x1bd   : > { %2993 = vst.msk [vmem:[%s3857_s20 + $0x92] ss:$4 sm:$0x3] %vm3938_vm0, %v770_v33  ;;  %3121 = vst.msk [vmem:[%s3857_s20 + $0x93] ss:$4 sm:$0x3] %vm3938_vm0, %v770_v33 }
 0x1be   : > { %2743 = vst.msk [vmem:[%s3857_s20 + $0xc0] ss:$4 sm:$0x3] %vm3938_vm0, %v798_v34  ;;  %2871 = vst.msk [vmem:[%s3857_s20 + $0xc1] ss:$4 sm:$0x3] %vm3938_vm0, %v798_v34 }
 0x1bf   : > { %2999 = vst.msk [vmem:[%s3857_s20 + $0xc2] ss:$4 sm:$0x3] %vm3938_vm0, %v798_v34  ;;  %3127 = vst.msk [vmem:[%s3857_s20 + $0xc3] ss:$4 sm:$0x3] %vm3938_vm0, %v798_v34 }
 0x1c0   : > { %2740 = vst.msk [vmem:[%s3857_s20 + $0xa8] ss:$4 sm:$0x3] %vm3938_vm0, %v769_v37  ;;  %2868 = vst.msk [vmem:[%s3857_s20 + $0xa9] ss:$4 sm:$0x3] %vm3938_vm0, %v769_v37 }
 0x1c1   : > { %2996 = vst.msk [vmem:[%s3857_s20 + $0xaa] ss:$4 sm:$0x3] %vm3938_vm0, %v769_v37  ;;  %3124 = vst.msk [vmem:[%s3857_s20 + $0xab] ss:$4 sm:$0x3] %vm3938_vm0, %v769_v37 }
 0x1c2   : > { %2741 = vst.msk [vmem:[%s3857_s20 + $0xb0] ss:$4 sm:$0x3] %vm3938_vm0, %v771_v38  ;;  %2869 = vst.msk [vmem:[%s3857_s20 + $0xb1] ss:$4 sm:$0x3] %vm3938_vm0, %v771_v38 }
 0x1c3   : > { %2997 = vst.msk [vmem:[%s3857_s20 + $0xb2] ss:$4 sm:$0x3] %vm3938_vm0, %v771_v38  ;;  %3125 = vst.msk [vmem:[%s3857_s20 + $0xb3] ss:$4 sm:$0x3] %vm3938_vm0, %v771_v38 }
 0x1c4   : > { %2747 = vst.msk [vmem:[%s3857_s20 + $0xe0] ss:$4 sm:$0x3] %vm3938_vm0, %v805_v39  ;;  %2875 = vst.msk [vmem:[%s3857_s20 + $0xe1] ss:$4 sm:$0x3] %vm3938_vm0, %v805_v39 }
 0x1c5   : > { %3003 = vst.msk [vmem:[%s3857_s20 + $0xe2] ss:$4 sm:$0x3] %vm3938_vm0, %v805_v39  ;;  %3131 = vst.msk [vmem:[%s3857_s20 + $0xe3] ss:$4 sm:$0x3] %vm3938_vm0, %v805_v39 }
 0x1c6   : > { %2738 = vst.msk [vmem:[%s3857_s20 + $0x98] ss:$4 sm:$0x3] %vm3938_vm0, %v772_v41  ;;  %2866 = vst.msk [vmem:[%s3857_s20 + $0x99] ss:$4 sm:$0x3] %vm3938_vm0, %v772_v41 }
 0x1c7   : > { %2994 = vst.msk [vmem:[%s3857_s20 + $0x9a] ss:$4 sm:$0x3] %vm3938_vm0, %v772_v41  ;;  %3122 = vst.msk [vmem:[%s3857_s20 + $0x9b] ss:$4 sm:$0x3] %vm3938_vm0, %v772_v41 }
 0x1c8   : > { %2744 = vst.msk [vmem:[%s3857_s20 + $0xc8] ss:$4 sm:$0x3] %vm3938_vm0, %v812_v42  ;;  %2872 = vst.msk [vmem:[%s3857_s20 + $0xc9] ss:$4 sm:$0x3] %vm3938_vm0, %v812_v42 }
 0x1c9   : > { %3000 = vst.msk [vmem:[%s3857_s20 + $0xca] ss:$4 sm:$0x3] %vm3938_vm0, %v812_v42  ;;  %3128 = vst.msk [vmem:[%s3857_s20 + $0xcb] ss:$4 sm:$0x3] %vm3938_vm0, %v812_v42 }
 0x1ca   : > { %2745 = vst.msk [vmem:[%s3857_s20 + $0xd0] ss:$4 sm:$0x3] %vm3938_vm0, %v820_v43  ;;  %2873 = vst.msk [vmem:[%s3857_s20 + $0xd1] ss:$4 sm:$0x3] %vm3938_vm0, %v820_v43 }
 0x1cb   : > { %3001 = vst.msk [vmem:[%s3857_s20 + $0xd2] ss:$4 sm:$0x3] %vm3938_vm0, %v820_v43  ;;  %3129 = vst.msk [vmem:[%s3857_s20 + $0xd3] ss:$4 sm:$0x3] %vm3938_vm0, %v820_v43 }
 0x1cc   : > { %v3424_v53 = vld [vmem:[#allocation2 + $0x60] ss:$8 sps:$4 sm:$0xff]   ;;  %2742 = vst.msk [vmem:[%s3857_s20 + $0xb8] ss:$4 sm:$0x3] %vm3938_vm0, %v773_v45  ;;  %v4466_v13 = vld [vmem:[#allocation2 + $0x70] sm:$0xff] }
 0x1cd   : > { %2870 = vst.msk [vmem:[%s3857_s20 + $0xb9] ss:$4 sm:$0x3] %vm3938_vm0, %v773_v45  ;;  %2998 = vst.msk [vmem:[%s3857_s20 + $0xba] ss:$4 sm:$0x3] %vm3938_vm0, %v773_v45  ;;  %v932_v12 = vrot.slane %v3424_v53, %v3932_v57 }
 0x1ce   : > { %3126 = vst.msk [vmem:[%s3857_s20 + $0xbb] ss:$4 sm:$0x3] %vm3938_vm0, %v773_v45  ;;  %2748 = vst.msk [vmem:[%s3857_s20 + $0xe8] ss:$4 sm:$0x3] %vm3938_vm0, %v819_v46 }
 0x1cf   : > { %2876 = vst.msk [vmem:[%s3857_s20 + $0xe9] ss:$4 sm:$0x3] %vm3938_vm0, %v819_v46  ;;  %3004 = vst.msk [vmem:[%s3857_s20 + $0xea] ss:$4 sm:$0x3] %vm3938_vm0, %v819_v46  ;;  %v948_v19 = vrot.slane %v932_v12, %v3932_v57  ;;  %v940_v20 = vcombine.high %v932_v12, %v932_v12 }
 0x1d0   : > { %3132 = vst.msk [vmem:[%s3857_s20 + $0xeb] ss:$4 sm:$0x3] %vm3938_vm0, %v819_v46  ;;  %2749 = vst.msk [vmem:[%s3857_s20 + $0xf0] ss:$4 sm:$0x3] %vm3938_vm0, %v821_v47 }
 0x1d1   : > { %2877 = vst.msk [vmem:[%s3857_s20 + $0xf1] ss:$4 sm:$0x3] %vm3938_vm0, %v821_v47  ;;  %3005 = vst.msk [vmem:[%s3857_s20 + $0xf2] ss:$4 sm:$0x3] %vm3938_vm0, %v821_v47  ;;  %v962_v26 = vrot.slane %v940_v20, %v3932_v57  ;;  %v970_v27 = vcombine.high %v948_v19, %v948_v19 }
 0x1d2   : > { %3133 = vst.msk [vmem:[%s3857_s20 + $0xf3] ss:$4 sm:$0x3] %vm3938_vm0, %v821_v47  ;;  %2746 = vst.msk [vmem:[%s3857_s20 + $0xd8] ss:$4 sm:$0x3] %vm3938_vm0, %v822_v49 }
 0x1d3   : > { %2874 = vst.msk [vmem:[%s3857_s20 + $0xd9] ss:$4 sm:$0x3] %vm3938_vm0, %v822_v49  ;;  %3002 = vst.msk [vmem:[%s3857_s20 + $0xda] ss:$4 sm:$0x3] %vm3938_vm0, %v822_v49  ;;  %v972_v37 = vcombine.high %v962_v26, %v962_v26 }
 0x1d4   : > { %3130 = vst.msk [vmem:[%s3857_s20 + $0xdb] ss:$4 sm:$0x3] %vm3938_vm0, %v822_v49  ;;  %2751 = vst.msk [vmem:[%s3857_s20 + $0x100] ss:$4 sm:$0x3] %vm3938_vm0, %v848_v50  ;;  %v1062_v49 = vrot.slane %v1040_v40, %v3932_v57 }
 0x1d5   : > { %2879 = vst.msk [vmem:[%s3857_s20 + $0x101] ss:$4 sm:$0x3] %vm3938_vm0, %v848_v50  ;;  %3007 = vst.msk [vmem:[%s3857_s20 + $0x102] ss:$4 sm:$0x3] %vm3938_vm0, %v848_v50 }
 0x1d6   : > { %3135 = vst.msk [vmem:[%s3857_s20 + $0x103] ss:$4 sm:$0x3] %vm3938_vm0, %v848_v50  ;;  %v4394_v0 = vld [vmem:[#allocation2 + $0x60] sm:$0xff]  ;;  %v4396_v2 = vld [vmem:[#allocation2 + $0x68] sm:$0xff]  ;;  %v4468_v14 = vld [vmem:[#allocation2 + $0x78] sm:$0xff]  ;;  %v1070_v50 = vcombine.high %v1048_v35, %v1048_v35 }
 0x1d7   : > { %v4398_v3 = vld [vmem:[#allocation2 + $0x70] ss:$8 sps:$4 sm:$0xff]   ;;  %2750 = vst.msk [vmem:[%s3857_s20 + $0xf8] ss:$4 sm:$0x3] %vm3938_vm0, %v823_v54  ;;  %v925_v17 = vcombine.high %v4394_v0, %v4396_v2  ;;  %v975_v24 = vcombine.high %v4466_v13, %v4468_v14  ;;  %v4633_v33 = vld [vmem:[#allocation2 + $0x80] sm:$0xff] }
 0x1d8   : > { %2878 = vst.msk [vmem:[%s3857_s20 + $0xf9] ss:$4 sm:$0x3] %vm3938_vm0, %v823_v54  ;;  %3006 = vst.msk [vmem:[%s3857_s20 + $0xfa] ss:$4 sm:$0x3] %vm3938_vm0, %v823_v54  ;;  %v982_v21 = vrot.slane %v4398_v3, %v3932_v57 }
 0x1d9   : > { %3134 = vst.msk [vmem:[%s3857_s20 + $0xfb] ss:$4 sm:$0x3] %vm3938_vm0, %v823_v54  ;;  %2755 = vst.msk [vmem:[%s3857_s20 + $0x120] ss:$4 sm:$0x3] %vm3938_vm0, %v855_v55  ;;  %v939_v23 = vrot.slane %v925_v17, %v3932_v57  ;;  %v4631_v32 = vrot.slane %v975_v24, %v3932_v57 }
 0x1da   : > { %2883 = vst.msk [vmem:[%s3857_s20 + $0x121] ss:$4 sm:$0x3] %vm3938_vm0, %v855_v55  ;;  %3011 = vst.msk [vmem:[%s3857_s20 + $0x122] ss:$4 sm:$0x3] %vm3938_vm0, %v855_v55  ;;  %v998_v28 = vrot.slane %v982_v21, %v3932_v57  ;;  %v990_v29 = vcombine.high %v982_v21, %v982_v21 }
 0x1db   : > { %3139 = vst.msk [vmem:[%s3857_s20 + $0x123] ss:$4 sm:$0x3] %vm3938_vm0, %v855_v55  ;;  %2752 = vst.msk [vmem:[%s3857_s20 + $0x108] ss:$4 sm:$0x3] %vm3938_vm0, %v862_v58  ;;  %v955_v30 = vrot.slane %v939_v23, %v3932_v57  ;;  %v941_v31 = vcombine.high %v939_v23, %v939_v23  ;;  %v1005_v44 = vrot.slane %v4631_v32, %v3932_v57 }
 0x1dc   : > { %2880 = vst.msk [vmem:[%s3857_s20 + $0x109] ss:$4 sm:$0x3] %vm3938_vm0, %v862_v58  ;;  %3008 = vst.msk [vmem:[%s3857_s20 + $0x10a] ss:$4 sm:$0x3] %vm3938_vm0, %v862_v58  ;;  %v1012_v38 = vrot.slane %v990_v29, %v3932_v57  ;;  %v1020_v39 = vcombine.high %v998_v28, %v998_v28  ;;  %v991_v45 = vcombine.high %v4631_v32, %v4631_v32 }
 0x1dd   : > { %3136 = vst.msk [vmem:[%s3857_s20 + $0x10b] ss:$4 sm:$0x3] %vm3938_vm0, %v862_v58  ;;  %2753 = vst.msk [vmem:[%s3857_s20 + $0x110] ss:$4 sm:$0x3] %vm3938_vm0, %v870_v59  ;;  %v969_v42 = vrot.slane %v941_v31, %v3932_v57  ;;  %v971_v43 = vcombine.high %v955_v30, %v955_v30  ;;  %v1021_v56 = vcombine.high %v1005_v44, %v1005_v44 }
 0x1de   : > { %2881 = vst.msk [vmem:[%s3857_s20 + $0x111] ss:$4 sm:$0x3] %vm3938_vm0, %v870_v59  ;;  %3009 = vst.msk [vmem:[%s3857_s20 + $0x112] ss:$4 sm:$0x3] %vm3938_vm0, %v870_v59  ;;  %v1022_v48 = vcombine.high %v1012_v38, %v1012_v38  ;;  %v1019_v55 = vrot.slane %v991_v45, %v3932_v57  ;;  %v1072_v58 = vcombine.high %v1062_v49, %v1062_v49 }
 0x1df   : > { %3137 = vst.msk [vmem:[%s3857_s20 + $0x113] ss:$4 sm:$0x3] %vm3938_vm0, %v870_v59  ;;  %2759 = vst.msk [vmem:[%s3857_s20 + $0x140] ss:$4 sm:$0x3] %vm3938_vm0, %v898_v62  ;;  %v973_v54 = vcombine.high %v969_v42, %v969_v42 }
 0x1e0   : > { %2887 = vst.msk [vmem:[%s3857_s20 + $0x141] ss:$4 sm:$0x3] %vm3938_vm0, %v898_v62  ;;  %3015 = vst.msk [vmem:[%s3857_s20 + $0x142] ss:$4 sm:$0x3] %vm3938_vm0, %v898_v62  ;;  %v1023_v0 = vcombine.high %v1019_v55, %v1019_v55 }
 0x1e1   : > { %3143 = vst.msk [vmem:[%s3857_s20 + $0x143] ss:$4 sm:$0x3] %vm3938_vm0, %v898_v62  ;;  %2756 = vst.msk [vmem:[%s3857_s20 + $0x128] ss:$4 sm:$0x3] %vm3938_vm0, %v869_v4 }
 0x1e2   : > { %2884 = vst.msk [vmem:[%s3857_s20 + $0x129] ss:$4 sm:$0x3] %vm3938_vm0, %v869_v4  ;;  %3012 = vst.msk [vmem:[%s3857_s20 + $0x12a] ss:$4 sm:$0x3] %vm3938_vm0, %v869_v4 }
 0x1e3   : > { %3140 = vst.msk [vmem:[%s3857_s20 + $0x12b] ss:$4 sm:$0x3] %vm3938_vm0, %v869_v4  ;;  %2757 = vst.msk [vmem:[%s3857_s20 + $0x130] ss:$4 sm:$0x3] %vm3938_vm0, %v871_v5 }
 0x1e4   : > { %2885 = vst.msk [vmem:[%s3857_s20 + $0x131] ss:$4 sm:$0x3] %vm3938_vm0, %v871_v5  ;;  %3013 = vst.msk [vmem:[%s3857_s20 + $0x132] ss:$4 sm:$0x3] %vm3938_vm0, %v871_v5 }
 0x1e5   : > { %3141 = vst.msk [vmem:[%s3857_s20 + $0x133] ss:$4 sm:$0x3] %vm3938_vm0, %v871_v5  ;;  %2763 = vst.msk [vmem:[%s3857_s20 + $0x160] ss:$4 sm:$0x3] %vm3938_vm0, %v905_v6 }
 0x1e6   : > { %2891 = vst.msk [vmem:[%s3857_s20 + $0x161] ss:$4 sm:$0x3] %vm3938_vm0, %v905_v6  ;;  %3019 = vst.msk [vmem:[%s3857_s20 + $0x162] ss:$4 sm:$0x3] %vm3938_vm0, %v905_v6 }
 0x1e7   : > { %3147 = vst.msk [vmem:[%s3857_s20 + $0x163] ss:$4 sm:$0x3] %vm3938_vm0, %v905_v6  ;;  %2754 = vst.msk [vmem:[%s3857_s20 + $0x118] ss:$4 sm:$0x3] %vm3938_vm0, %v872_v9 }
 0x1e8   : > { %2882 = vst.msk [vmem:[%s3857_s20 + $0x119] ss:$4 sm:$0x3] %vm3938_vm0, %v872_v9  ;;  %3010 = vst.msk [vmem:[%s3857_s20 + $0x11a] ss:$4 sm:$0x3] %vm3938_vm0, %v872_v9 }
 0x1e9   : > { %3138 = vst.msk [vmem:[%s3857_s20 + $0x11b] ss:$4 sm:$0x3] %vm3938_vm0, %v872_v9  ;;  %2760 = vst.msk [vmem:[%s3857_s20 + $0x148] ss:$4 sm:$0x3] %vm3938_vm0, %v912_v10 }
 0x1ea   : > { %2888 = vst.msk [vmem:[%s3857_s20 + $0x149] ss:$4 sm:$0x3] %vm3938_vm0, %v912_v10  ;;  %3016 = vst.msk [vmem:[%s3857_s20 + $0x14a] ss:$4 sm:$0x3] %vm3938_vm0, %v912_v10 }
 0x1eb   : > { %3144 = vst.msk [vmem:[%s3857_s20 + $0x14b] ss:$4 sm:$0x3] %vm3938_vm0, %v912_v10  ;;  %2761 = vst.msk [vmem:[%s3857_s20 + $0x150] ss:$4 sm:$0x3] %vm3938_vm0, %v920_v11 }
 0x1ec   : > { %2889 = vst.msk [vmem:[%s3857_s20 + $0x151] ss:$4 sm:$0x3] %vm3938_vm0, %v920_v11  ;;  %3017 = vst.msk [vmem:[%s3857_s20 + $0x152] ss:$4 sm:$0x3] %vm3938_vm0, %v920_v11 }
 0x1ed   : > { %3145 = vst.msk [vmem:[%s3857_s20 + $0x153] ss:$4 sm:$0x3] %vm3938_vm0, %v920_v11  ;;  %2758 = vst.msk [vmem:[%s3857_s20 + $0x138] ss:$4 sm:$0x3] %vm3938_vm0, %v873_v15 }
 0x1ee   : > { %2886 = vst.msk [vmem:[%s3857_s20 + $0x139] ss:$4 sm:$0x3] %vm3938_vm0, %v873_v15  ;;  %3014 = vst.msk [vmem:[%s3857_s20 + $0x13a] ss:$4 sm:$0x3] %vm3938_vm0, %v873_v15 }
 0x1ef   : > { %3142 = vst.msk [vmem:[%s3857_s20 + $0x13b] ss:$4 sm:$0x3] %vm3938_vm0, %v873_v15  ;;  %2764 = vst.msk [vmem:[%s3857_s20 + $0x168] ss:$4 sm:$0x3] %vm3938_vm0, %v919_v16 }
 0x1f0   : > { %2892 = vst.msk [vmem:[%s3857_s20 + $0x169] ss:$4 sm:$0x3] %vm3938_vm0, %v919_v16  ;;  %3020 = vst.msk [vmem:[%s3857_s20 + $0x16a] ss:$4 sm:$0x3] %vm3938_vm0, %v919_v16 }
 0x1f1   : > { %3148 = vst.msk [vmem:[%s3857_s20 + $0x16b] ss:$4 sm:$0x3] %vm3938_vm0, %v919_v16  ;;  %2765 = vst.msk [vmem:[%s3857_s20 + $0x170] ss:$4 sm:$0x3] %vm3938_vm0, %v921_v1 }
 0x1f2   : > { %2893 = vst.msk [vmem:[%s3857_s20 + $0x171] ss:$4 sm:$0x3] %vm3938_vm0, %v921_v1  ;;  %3021 = vst.msk [vmem:[%s3857_s20 + $0x172] ss:$4 sm:$0x3] %vm3938_vm0, %v921_v1 }
 0x1f3   : > { %3149 = vst.msk [vmem:[%s3857_s20 + $0x173] ss:$4 sm:$0x3] %vm3938_vm0, %v921_v1  ;;  %2762 = vst.msk [vmem:[%s3857_s20 + $0x158] ss:$4 sm:$0x3] %vm3938_vm0, %v922_v18 }
 0x1f4   : > { %2890 = vst.msk [vmem:[%s3857_s20 + $0x159] ss:$4 sm:$0x3] %vm3938_vm0, %v922_v18  ;;  %3018 = vst.msk [vmem:[%s3857_s20 + $0x15a] ss:$4 sm:$0x3] %vm3938_vm0, %v922_v18 }
 0x1f5   : > { %3146 = vst.msk [vmem:[%s3857_s20 + $0x15b] ss:$4 sm:$0x3] %vm3938_vm0, %v922_v18  ;;  %2767 = vst.msk [vmem:[%s3857_s20 + $0x180] ss:$4 sm:$0x3] %vm3938_vm0, %v948_v19 }
 0x1f6   : > { %2895 = vst.msk [vmem:[%s3857_s20 + $0x181] ss:$4 sm:$0x3] %vm3938_vm0, %v948_v19  ;;  %3023 = vst.msk [vmem:[%s3857_s20 + $0x182] ss:$4 sm:$0x3] %vm3938_vm0, %v948_v19 }
 0x1f7   : > { %3151 = vst.msk [vmem:[%s3857_s20 + $0x183] ss:$4 sm:$0x3] %vm3938_vm0, %v948_v19  ;;  %2766 = vst.msk [vmem:[%s3857_s20 + $0x178] ss:$4 sm:$0x3] %vm3938_vm0, %v923_v22 }
 0x1f8   : > { %2894 = vst.msk [vmem:[%s3857_s20 + $0x179] ss:$4 sm:$0x3] %vm3938_vm0, %v923_v22  ;;  %3022 = vst.msk [vmem:[%s3857_s20 + $0x17a] ss:$4 sm:$0x3] %vm3938_vm0, %v923_v22 }
 0x1f9   : > { %3150 = vst.msk [vmem:[%s3857_s20 + $0x17b] ss:$4 sm:$0x3] %vm3938_vm0, %v923_v22  ;;  %v4635_v34 = vld [vmem:[#allocation2 + $0x88] sm:$0xff]  ;;  %v4639_v36 = vld [vmem:[#allocation2 + $0x90] ss:$8 sps:$4 sm:$0xff]  }
 0x1fa   : > { %2768 = vst.msk [vmem:[%s3857_s20 + $0x188] ss:$4 sm:$0x3] %vm3938_vm0, %v962_v26  ;;  %2896 = vst.msk [vmem:[%s3857_s20 + $0x189] ss:$4 sm:$0x3] %vm3938_vm0, %v962_v26  ;;  %v1025_v51 = vcombine.high %v4633_v33, %v4635_v34  ;;  %v1082_v61 = vrot.slane %v4639_v36, %v3932_v57 }
 0x1fb   : > { %3024 = vst.msk [vmem:[%s3857_s20 + $0x18a] ss:$4 sm:$0x3] %vm3938_vm0, %v962_v26  ;;  %3152 = vst.msk [vmem:[%s3857_s20 + $0x18b] ss:$4 sm:$0x3] %vm3938_vm0, %v962_v26 }
 0x1fc   : > { %2769 = vst.msk [vmem:[%s3857_s20 + $0x190] ss:$4 sm:$0x3] %vm3938_vm0, %v970_v27  ;;  %2897 = vst.msk [vmem:[%s3857_s20 + $0x191] ss:$4 sm:$0x3] %vm3938_vm0, %v970_v27  ;;  %v1039_v59 = vrot.slane %v1025_v51, %v3932_v57  ;;  %v1098_v2 = vrot.slane %v1082_v61, %v3932_v57  ;;  %v1090_v3 = vcombine.high %v1082_v61, %v1082_v61 }
 0x1fd   : > { %3025 = vst.msk [vmem:[%s3857_s20 + $0x192] ss:$4 sm:$0x3] %vm3938_vm0, %v970_v27  ;;  %3153 = vst.msk [vmem:[%s3857_s20 + $0x193] ss:$4 sm:$0x3] %vm3938_vm0, %v970_v27 }
 0x1fe   : > { %2775 = vst.msk [vmem:[%s3857_s20 + $0x1c0] ss:$4 sm:$0x3] %vm3938_vm0, %v998_v28  ;;  %2903 = vst.msk [vmem:[%s3857_s20 + $0x1c1] ss:$4 sm:$0x3] %vm3938_vm0, %v998_v28  ;;  %v1055_v5 = vrot.slane %v1039_v59, %v3932_v57  ;;  %v1041_v6 = vcombine.high %v1039_v59, %v1039_v59  ;;  %v1112_v9 = vrot.slane %v1090_v3, %v3932_v57 }
 0x1ff   : > { %3031 = vst.msk [vmem:[%s3857_s20 + $0x1c2] ss:$4 sm:$0x3] %vm3938_vm0, %v998_v28  ;;  %3159 = vst.msk [vmem:[%s3857_s20 + $0x1c3] ss:$4 sm:$0x3] %vm3938_vm0, %v998_v28  ;;  %v1120_v10 = vcombine.high %v1098_v2, %v1098_v2 }
 0x200   : > { %v4680_v41 = vld [vmem:[#allocation2 + $0xa0] ss:$8 sps:$4 sm:$0xff]   ;;  %2771 = vst.msk [vmem:[%s3857_s20 + $0x1a0] ss:$4 sm:$0x3] %vm3938_vm0, %v955_v30  ;;  %v4711_v46 = vld [vmem:[#allocation2 + $0x90] sm:$0xff]  ;;  %v1069_v14 = vrot.slane %v1041_v6, %v3932_v57  ;;  %v1071_v15 = vcombine.high %v1055_v5, %v1055_v5  ;;  %v1122_v20 = vcombine.high %v1112_v9, %v1112_v9 }
 0x201   : > { %2899 = vst.msk [vmem:[%s3857_s20 + $0x1a1] ss:$4 sm:$0x3] %vm3938_vm0, %v955_v30  ;;  %3027 = vst.msk [vmem:[%s3857_s20 + $0x1a2] ss:$4 sm:$0x3] %vm3938_vm0, %v955_v30  ;;  %v4838_v63 = vrot.slane %v4680_v41, %v3932_v57 }
 0x202   : > { %3155 = vst.msk [vmem:[%s3857_s20 + $0x1a3] ss:$4 sm:$0x3] %vm3938_vm0, %v955_v30  ;;  %2783 = vst.msk [vmem:[%s3857_s20 + $0x200] ss:$4 sm:$0x3] %vm3938_vm0, %v1048_v35  ;;  %v1073_v27 = vcombine.high %v1069_v14, %v1069_v14 }
 0x203   : > { %2911 = vst.msk [vmem:[%s3857_s20 + $0x201] ss:$4 sm:$0x3] %vm3938_vm0, %v1048_v35  ;;  %3039 = vst.msk [vmem:[%s3857_s20 + $0x202] ss:$4 sm:$0x3] %vm3938_vm0, %v1048_v35  ;;  %v1148_v8 = vrot.slane %v4838_v63, %v3932_v57  ;;  %v1140_v11 = vcombine.high %v4838_v63, %v4838_v63 }
 0x204   : > { %3167 = vst.msk [vmem:[%s3857_s20 + $0x203] ss:$4 sm:$0x3] %vm3938_vm0, %v1048_v35  ;;  %v4713_v47 = vld [vmem:[#allocation2 + $0x98] sm:$0xff]  ;;  %v4754_v52 = vld [vmem:[#allocation2 + $0xa0] sm:$0xff]  ;;  %v4756_v53 = vld [vmem:[#allocation2 + $0xa8] sm:$0xff] }
 0x205   : > { %2770 = vst.msk [vmem:[%s3857_s20 + $0x198] ss:$4 sm:$0x3] %vm3938_vm0, %v972_v37  ;;  %2898 = vst.msk [vmem:[%s3857_s20 + $0x199] ss:$4 sm:$0x3] %vm3938_vm0, %v972_v37  ;;  %v1075_v62 = vcombine.high %v4711_v46, %v4713_v47  ;;  %v1125_v4 = vcombine.high %v4754_v52, %v4756_v53  ;;  %v1162_v21 = vrot.slane %v1140_v11, %v3932_v57 }
 0x206   : > { %3026 = vst.msk [vmem:[%s3857_s20 + $0x19a] ss:$4 sm:$0x3] %vm3938_vm0, %v972_v37  ;;  %3154 = vst.msk [vmem:[%s3857_s20 + $0x19b] ss:$4 sm:$0x3] %vm3938_vm0, %v972_v37  ;;  %v1170_v22 = vcombine.high %v1148_v8, %v1148_v8 }
 0x207   : > { %2776 = vst.msk [vmem:[%s3857_s20 + $0x1c8] ss:$4 sm:$0x3] %vm3938_vm0, %v1012_v38  ;;  %2904 = vst.msk [vmem:[%s3857_s20 + $0x1c9] ss:$4 sm:$0x3] %vm3938_vm0, %v1012_v38  ;;  %v1089_v7 = vrot.slane %v1075_v62, %v3932_v57  ;;  %v4923_v12 = vrot.slane %v1125_v4, %v3932_v57  ;;  %v1172_v31 = vcombine.high %v1162_v21, %v1162_v21 }
 0x208   : > { %3032 = vst.msk [vmem:[%s3857_s20 + $0x1ca] ss:$4 sm:$0x3] %vm3938_vm0, %v1012_v38  ;;  %3160 = vst.msk [vmem:[%s3857_s20 + $0x1cb] ss:$4 sm:$0x3] %vm3938_vm0, %v1012_v38 }
 0x209   : > { %2777 = vst.msk [vmem:[%s3857_s20 + $0x1d0] ss:$4 sm:$0x3] %vm3938_vm0, %v1020_v39  ;;  %2905 = vst.msk [vmem:[%s3857_s20 + $0x1d1] ss:$4 sm:$0x3] %vm3938_vm0, %v1020_v39  ;;  %v1105_v16 = vrot.slane %v1089_v7, %v3932_v57  ;;  %v1091_v1 = vcombine.high %v1089_v7, %v1089_v7  ;;  %v1155_v23 = vrot.slane %v4923_v12, %v3932_v57 }
 0x20a   : > { %3033 = vst.msk [vmem:[%s3857_s20 + $0x1d2] ss:$4 sm:$0x3] %vm3938_vm0, %v1020_v39  ;;  %3161 = vst.msk [vmem:[%s3857_s20 + $0x1d3] ss:$4 sm:$0x3] %vm3938_vm0, %v1020_v39  ;;  %v1141_v30 = vcombine.high %v4923_v12, %v4923_v12 }
 0x20b   : > { %2772 = vst.msk [vmem:[%s3857_s20 + $0x1a8] ss:$4 sm:$0x3] %vm3938_vm0, %v969_v42  ;;  %2900 = vst.msk [vmem:[%s3857_s20 + $0x1a9] ss:$4 sm:$0x3] %vm3938_vm0, %v969_v42  ;;  %v1119_v28 = vrot.slane %v1091_v1, %v3932_v57  ;;  %v1121_v29 = vcombine.high %v1105_v16, %v1105_v16  ;;  %v1171_v32 = vcombine.high %v1155_v23, %v1155_v23 }
 0x20c   : > { %3028 = vst.msk [vmem:[%s3857_s20 + $0x1aa] ss:$4 sm:$0x3] %vm3938_vm0, %v969_v42  ;;  %3156 = vst.msk [vmem:[%s3857_s20 + $0x1ab] ss:$4 sm:$0x3] %vm3938_vm0, %v969_v42  ;;  %v1169_v36 = vrot.slane %v1141_v30, %v3932_v57 }
 0x20d   : > { %2773 = vst.msk [vmem:[%s3857_s20 + $0x1b0] ss:$4 sm:$0x3] %vm3938_vm0, %v971_v43  ;;  %2901 = vst.msk [vmem:[%s3857_s20 + $0x1b1] ss:$4 sm:$0x3] %vm3938_vm0, %v971_v43  ;;  %v1123_v35 = vcombine.high %v1119_v28, %v1119_v28 }
 0x20e   : > { %3029 = vst.msk [vmem:[%s3857_s20 + $0x1b2] ss:$4 sm:$0x3] %vm3938_vm0, %v971_v43  ;;  %3157 = vst.msk [vmem:[%s3857_s20 + $0x1b3] ss:$4 sm:$0x3] %vm3938_vm0, %v971_v43  ;;  %v1173_v43 = vcombine.high %v1169_v36, %v1169_v36 }
 0x20f   : > { %2779 = vst.msk [vmem:[%s3857_s20 + $0x1e0] ss:$4 sm:$0x3] %vm3938_vm0, %v1005_v44  ;;  %2907 = vst.msk [vmem:[%s3857_s20 + $0x1e1] ss:$4 sm:$0x3] %vm3938_vm0, %v1005_v44 }
 0x210   : > { %3035 = vst.msk [vmem:[%s3857_s20 + $0x1e2] ss:$4 sm:$0x3] %vm3938_vm0, %v1005_v44  ;;  %3163 = vst.msk [vmem:[%s3857_s20 + $0x1e3] ss:$4 sm:$0x3] %vm3938_vm0, %v1005_v44 }
 0x211   : > { %2778 = vst.msk [vmem:[%s3857_s20 + $0x1d8] ss:$4 sm:$0x3] %vm3938_vm0, %v1022_v48  ;;  %2906 = vst.msk [vmem:[%s3857_s20 + $0x1d9] ss:$4 sm:$0x3] %vm3938_vm0, %v1022_v48 }
 0x212   : > { %3034 = vst.msk [vmem:[%s3857_s20 + $0x1da] ss:$4 sm:$0x3] %vm3938_vm0, %v1022_v48  ;;  %3162 = vst.msk [vmem:[%s3857_s20 + $0x1db] ss:$4 sm:$0x3] %vm3938_vm0, %v1022_v48 }
 0x213   : > { %2784 = vst.msk [vmem:[%s3857_s20 + $0x208] ss:$4 sm:$0x3] %vm3938_vm0, %v1062_v49  ;;  %2912 = vst.msk [vmem:[%s3857_s20 + $0x209] ss:$4 sm:$0x3] %vm3938_vm0, %v1062_v49 }
 0x214   : > { %3040 = vst.msk [vmem:[%s3857_s20 + $0x20a] ss:$4 sm:$0x3] %vm3938_vm0, %v1062_v49  ;;  %3168 = vst.msk [vmem:[%s3857_s20 + $0x20b] ss:$4 sm:$0x3] %vm3938_vm0, %v1062_v49 }
 0x215   : > { %2785 = vst.msk [vmem:[%s3857_s20 + $0x210] ss:$4 sm:$0x3] %vm3938_vm0, %v1070_v50  ;;  %2913 = vst.msk [vmem:[%s3857_s20 + $0x211] ss:$4 sm:$0x3] %vm3938_vm0, %v1070_v50 }
 0x216   : > { %3041 = vst.msk [vmem:[%s3857_s20 + $0x212] ss:$4 sm:$0x3] %vm3938_vm0, %v1070_v50  ;;  %3169 = vst.msk [vmem:[%s3857_s20 + $0x213] ss:$4 sm:$0x3] %vm3938_vm0, %v1070_v50 }
 0x217   : > { %2774 = vst.msk [vmem:[%s3857_s20 + $0x1b8] ss:$4 sm:$0x3] %vm3938_vm0, %v973_v54  ;;  %2902 = vst.msk [vmem:[%s3857_s20 + $0x1b9] ss:$4 sm:$0x3] %vm3938_vm0, %v973_v54 }
 0x218   : > { %3030 = vst.msk [vmem:[%s3857_s20 + $0x1ba] ss:$4 sm:$0x3] %vm3938_vm0, %v973_v54  ;;  %3158 = vst.msk [vmem:[%s3857_s20 + $0x1bb] ss:$4 sm:$0x3] %vm3938_vm0, %v973_v54 }
 0x219   : > { %2780 = vst.msk [vmem:[%s3857_s20 + $0x1e8] ss:$4 sm:$0x3] %vm3938_vm0, %v1019_v55  ;;  %2908 = vst.msk [vmem:[%s3857_s20 + $0x1e9] ss:$4 sm:$0x3] %vm3938_vm0, %v1019_v55 }
 0x21a   : > { %3036 = vst.msk [vmem:[%s3857_s20 + $0x1ea] ss:$4 sm:$0x3] %vm3938_vm0, %v1019_v55  ;;  %3164 = vst.msk [vmem:[%s3857_s20 + $0x1eb] ss:$4 sm:$0x3] %vm3938_vm0, %v1019_v55 }
 0x21b   : > { %2781 = vst.msk [vmem:[%s3857_s20 + $0x1f0] ss:$4 sm:$0x3] %vm3938_vm0, %v1021_v56  ;;  %2909 = vst.msk [vmem:[%s3857_s20 + $0x1f1] ss:$4 sm:$0x3] %vm3938_vm0, %v1021_v56 }
 0x21c   : > { %3037 = vst.msk [vmem:[%s3857_s20 + $0x1f2] ss:$4 sm:$0x3] %vm3938_vm0, %v1021_v56  ;;  %3165 = vst.msk [vmem:[%s3857_s20 + $0x1f3] ss:$4 sm:$0x3] %vm3938_vm0, %v1021_v56 }
 0x21d   : > { %2786 = vst.msk [vmem:[%s3857_s20 + $0x218] ss:$4 sm:$0x3] %vm3938_vm0, %v1072_v58  ;;  %2914 = vst.msk [vmem:[%s3857_s20 + $0x219] ss:$4 sm:$0x3] %vm3938_vm0, %v1072_v58 }
 0x21e   : > { %3042 = vst.msk [vmem:[%s3857_s20 + $0x21a] ss:$4 sm:$0x3] %vm3938_vm0, %v1072_v58  ;;  %3170 = vst.msk [vmem:[%s3857_s20 + $0x21b] ss:$4 sm:$0x3] %vm3938_vm0, %v1072_v58 }
 0x21f   : > { %2782 = vst.msk [vmem:[%s3857_s20 + $0x1f8] ss:$4 sm:$0x3] %vm3938_vm0, %v1023_v0  ;;  %2910 = vst.msk [vmem:[%s3857_s20 + $0x1f9] ss:$4 sm:$0x3] %vm3938_vm0, %v1023_v0 }
 0x220   : > { %3038 = vst.msk [vmem:[%s3857_s20 + $0x1fa] ss:$4 sm:$0x3] %vm3938_vm0, %v1023_v0  ;;  %3166 = vst.msk [vmem:[%s3857_s20 + $0x1fb] ss:$4 sm:$0x3] %vm3938_vm0, %v1023_v0 }
 0x221   : > { %2791 = vst.msk [vmem:[%s3857_s20 + $0x240] ss:$4 sm:$0x3] %vm3938_vm0, %v1098_v2  ;;  %2919 = vst.msk [vmem:[%s3857_s20 + $0x241] ss:$4 sm:$0x3] %vm3938_vm0, %v1098_v2 }
 0x222   : > { %3047 = vst.msk [vmem:[%s3857_s20 + $0x242] ss:$4 sm:$0x3] %vm3938_vm0, %v1098_v2  ;;  %3175 = vst.msk [vmem:[%s3857_s20 + $0x243] ss:$4 sm:$0x3] %vm3938_vm0, %v1098_v2 }
 0x223   : > { %v4925_v13 = vld [vmem:[#allocation2 + $0xb0] ss:$8 sps:$4 sm:$0xff]   ;;  %2787 = vst.msk [vmem:[%s3857_s20 + $0x220] ss:$4 sm:$0x3] %vm3938_vm0, %v1055_v5  ;;  %v4986_v24 = vld [vmem:[#allocation2 + $0xc0] sm:$0xff] }
 0x224   : > { %2915 = vst.msk [vmem:[%s3857_s20 + $0x221] ss:$4 sm:$0x3] %vm3938_vm0, %v1055_v5  ;;  %3043 = vst.msk [vmem:[%s3857_s20 + $0x222] ss:$4 sm:$0x3] %vm3938_vm0, %v1055_v5  ;;  %v1182_v33 = vrot.slane %v4925_v13, %v3932_v57 }
 0x225   : > { %3171 = vst.msk [vmem:[%s3857_s20 + $0x223] ss:$4 sm:$0x3] %vm3938_vm0, %v1055_v5  ;;  %2799 = vst.msk [vmem:[%s3857_s20 + $0x280] ss:$4 sm:$0x3] %vm3938_vm0, %v1148_v8 }
 0x226   : > { %2927 = vst.msk [vmem:[%s3857_s20 + $0x281] ss:$4 sm:$0x3] %vm3938_vm0, %v1148_v8  ;;  %3055 = vst.msk [vmem:[%s3857_s20 + $0x282] ss:$4 sm:$0x3] %vm3938_vm0, %v1148_v8  ;;  %v1198_v39 = vrot.slane %v1182_v33, %v3932_v57  ;;  %v1190_v40 = vcombine.high %v1182_v33, %v1182_v33 }
 0x227   : > { %3183 = vst.msk [vmem:[%s3857_s20 + $0x283] ss:$4 sm:$0x3] %vm3938_vm0, %v1148_v8  ;;  %v4953_v17 = vld [vmem:[#allocation2 + $0xb0] sm:$0xff]  ;;  %v4955_v18 = vld [vmem:[#allocation2 + $0xb8] sm:$0xff]  ;;  %v4988_v25 = vld [vmem:[#allocation2 + $0xc8] sm:$0xff] }
 0x228   : > { %v4957_v19 = vld [vmem:[#allocation2 + $0xc0] ss:$8 sps:$4 sm:$0xff]   ;;  %2792 = vst.msk [vmem:[%s3857_s20 + $0x248] ss:$4 sm:$0x3] %vm3938_vm0, %v1112_v9  ;;  %v1175_v34 = vcombine.high %v4953_v17, %v4955_v18  ;;  %v1225_v38 = vcombine.high %v4986_v24, %v4988_v25  ;;  %v1212_v47 = vrot.slane %v1190_v40, %v3932_v57  ;;  %v1220_v48 = vcombine.high %v1198_v39, %v1198_v39  ;;  %v5222_v56 = vld [vmem:[#allocation2 + $0xd0] sm:$0xff] }
 0x229   : > { %2920 = vst.msk [vmem:[%s3857_s20 + $0x249] ss:$4 sm:$0x3] %vm3938_vm0, %v1112_v9  ;;  %3048 = vst.msk [vmem:[%s3857_s20 + $0x24a] ss:$4 sm:$0x3] %vm3938_vm0, %v1112_v9  ;;  %v1232_v37 = vrot.slane %v4957_v19, %v3932_v57 }
 0x22a   : > { %3176 = vst.msk [vmem:[%s3857_s20 + $0x24b] ss:$4 sm:$0x3] %vm3938_vm0, %v1112_v9  ;;  %2793 = vst.msk [vmem:[%s3857_s20 + $0x250] ss:$4 sm:$0x3] %vm3938_vm0, %v1120_v10  ;;  %v1189_v41 = vrot.slane %v1175_v34, %v3932_v57  ;;  %v1239_v46 = vrot.slane %v1225_v38, %v3932_v57  ;;  %v1222_v59 = vcombine.high %v1212_v47, %v1212_v47 }
 0x22b   : > { %2921 = vst.msk [vmem:[%s3857_s20 + $0x251] ss:$4 sm:$0x3] %vm3938_vm0, %v1120_v10  ;;  %3049 = vst.msk [vmem:[%s3857_s20 + $0x252] ss:$4 sm:$0x3] %vm3938_vm0, %v1120_v10  ;;  %v1248_v44 = vrot.slane %v1232_v37, %v3932_v57  ;;  %v1240_v45 = vcombine.high %v1232_v37, %v1232_v37 }
 0x22c   : > { %3177 = vst.msk [vmem:[%s3857_s20 + $0x253] ss:$4 sm:$0x3] %vm3938_vm0, %v1120_v10  ;;  %v4990_v26 = vld [vmem:[#allocation2 + $0xd0] ss:$8 sps:$4 sm:$0xff]   ;;  %v1205_v49 = vrot.slane %v1189_v41, %v3932_v57  ;;  %v1191_v50 = vcombine.high %v1189_v41, %v1189_v41  ;;  %v1255_v54 = vrot.slane %v1239_v46, %v3932_v57  ;;  %v1241_v55 = vcombine.high %v1239_v46, %v1239_v46  ;;  %v5267_v2 = vld [vmem:[#allocation2 + $0xe0] sm:$0xff] }
 0x22d   : > { %2788 = vst.msk [vmem:[%s3857_s20 + $0x228] ss:$4 sm:$0x3] %vm3938_vm0, %v1069_v14  ;;  %2916 = vst.msk [vmem:[%s3857_s20 + $0x229] ss:$4 sm:$0x3] %vm3938_vm0, %v1069_v14  ;;  %v5152_v42 = vrot.slane %v4990_v26, %v3932_v57  ;;  %v1262_v52 = vrot.slane %v1240_v45, %v3932_v57  ;;  %v1270_v53 = vcombine.high %v1248_v44, %v1248_v44 }
 0x22e   : > { %3044 = vst.msk [vmem:[%s3857_s20 + $0x22a] ss:$4 sm:$0x3] %vm3938_vm0, %v1069_v14  ;;  %3172 = vst.msk [vmem:[%s3857_s20 + $0x22b] ss:$4 sm:$0x3] %vm3938_vm0, %v1069_v14  ;;  %v1219_v62 = vrot.slane %v1191_v50, %v3932_v57  ;;  %v1221_v63 = vcombine.high %v1205_v49, %v1205_v49  ;;  %v1269_v5 = vrot.slane %v1241_v55, %v3932_v57 }
 0x22f   : > { %2789 = vst.msk [vmem:[%s3857_s20 + $0x230] ss:$4 sm:$0x3] %vm3938_vm0, %v1071_v15  ;;  %2917 = vst.msk [vmem:[%s3857_s20 + $0x231] ss:$4 sm:$0x3] %vm3938_vm0, %v1071_v15  ;;  %v1298_v0 = vrot.slane %v5152_v42, %v3932_v57  ;;  %v1272_v4 = vcombine.high %v1262_v52, %v1262_v52  ;;  %v1271_v6 = vcombine.high %v1255_v54, %v1255_v54 }
 0x230   : > { %3045 = vst.msk [vmem:[%s3857_s20 + $0x232] ss:$4 sm:$0x3] %vm3938_vm0, %v1071_v15  ;;  %3173 = vst.msk [vmem:[%s3857_s20 + $0x233] ss:$4 sm:$0x3] %vm3938_vm0, %v1071_v15  ;;  %v1290_v7 = vcombine.high %v5152_v42, %v5152_v42  ;;  %v1223_v10 = vcombine.high %v1219_v62, %v1219_v62  ;;  %v1273_v14 = vcombine.high %v1269_v5, %v1269_v5 }
 0x231   : > { %2795 = vst.msk [vmem:[%s3857_s20 + $0x260] ss:$4 sm:$0x3] %vm3938_vm0, %v1105_v16  ;;  %2923 = vst.msk [vmem:[%s3857_s20 + $0x261] ss:$4 sm:$0x3] %vm3938_vm0, %v1105_v16  ;;  %v1320_v11 = vcombine.high %v1298_v0, %v1298_v0 }
 0x232   : > { %3051 = vst.msk [vmem:[%s3857_s20 + $0x262] ss:$4 sm:$0x3] %vm3938_vm0, %v1105_v16  ;;  %3179 = vst.msk [vmem:[%s3857_s20 + $0x263] ss:$4 sm:$0x3] %vm3938_vm0, %v1105_v16  ;;  %v1312_v15 = vrot.slane %v1290_v7, %v3932_v57 }
 0x233   : > { %2794 = vst.msk [vmem:[%s3857_s20 + $0x258] ss:$4 sm:$0x3] %vm3938_vm0, %v1122_v20  ;;  %2922 = vst.msk [vmem:[%s3857_s20 + $0x259] ss:$4 sm:$0x3] %vm3938_vm0, %v1122_v20 }
 0x234   : > { %3050 = vst.msk [vmem:[%s3857_s20 + $0x25a] ss:$4 sm:$0x3] %vm3938_vm0, %v1122_v20  ;;  %3178 = vst.msk [vmem:[%s3857_s20 + $0x25b] ss:$4 sm:$0x3] %vm3938_vm0, %v1122_v20 }
 0x235   : > { %2800 = vst.msk [vmem:[%s3857_s20 + $0x288] ss:$4 sm:$0x3] %vm3938_vm0, %v1162_v21  ;;  %2928 = vst.msk [vmem:[%s3857_s20 + $0x289] ss:$4 sm:$0x3] %vm3938_vm0, %v1162_v21 }
 0x236   : > { %3056 = vst.msk [vmem:[%s3857_s20 + $0x28a] ss:$4 sm:$0x3] %vm3938_vm0, %v1162_v21  ;;  %3184 = vst.msk [vmem:[%s3857_s20 + $0x28b] ss:$4 sm:$0x3] %vm3938_vm0, %v1162_v21  ;;  %v1322_v21 = vcombine.high %v1312_v15, %v1312_v15 }
 0x237   : > { %2801 = vst.msk [vmem:[%s3857_s20 + $0x290] ss:$4 sm:$0x3] %vm3938_vm0, %v1170_v22  ;;  %2929 = vst.msk [vmem:[%s3857_s20 + $0x291] ss:$4 sm:$0x3] %vm3938_vm0, %v1170_v22 }
 0x238   : > { %3057 = vst.msk [vmem:[%s3857_s20 + $0x292] ss:$4 sm:$0x3] %vm3938_vm0, %v1170_v22  ;;  %3185 = vst.msk [vmem:[%s3857_s20 + $0x293] ss:$4 sm:$0x3] %vm3938_vm0, %v1170_v22 }
 0x239   : > { %2803 = vst.msk [vmem:[%s3857_s20 + $0x2a0] ss:$4 sm:$0x3] %vm3938_vm0, %v1155_v23  ;;  %2931 = vst.msk [vmem:[%s3857_s20 + $0x2a1] ss:$4 sm:$0x3] %vm3938_vm0, %v1155_v23 }
 0x23a   : > { %3059 = vst.msk [vmem:[%s3857_s20 + $0x2a2] ss:$4 sm:$0x3] %vm3938_vm0, %v1155_v23  ;;  %3187 = vst.msk [vmem:[%s3857_s20 + $0x2a3] ss:$4 sm:$0x3] %vm3938_vm0, %v1155_v23 }
 0x23b   : > { %2790 = vst.msk [vmem:[%s3857_s20 + $0x238] ss:$4 sm:$0x3] %vm3938_vm0, %v1073_v27  ;;  %2918 = vst.msk [vmem:[%s3857_s20 + $0x239] ss:$4 sm:$0x3] %vm3938_vm0, %v1073_v27 }
 0x23c   : > { %3046 = vst.msk [vmem:[%s3857_s20 + $0x23a] ss:$4 sm:$0x3] %vm3938_vm0, %v1073_v27  ;;  %3174 = vst.msk [vmem:[%s3857_s20 + $0x23b] ss:$4 sm:$0x3] %vm3938_vm0, %v1073_v27 }
 0x23d   : > { %2796 = vst.msk [vmem:[%s3857_s20 + $0x268] ss:$4 sm:$0x3] %vm3938_vm0, %v1119_v28  ;;  %2924 = vst.msk [vmem:[%s3857_s20 + $0x269] ss:$4 sm:$0x3] %vm3938_vm0, %v1119_v28 }
 0x23e   : > { %3052 = vst.msk [vmem:[%s3857_s20 + $0x26a] ss:$4 sm:$0x3] %vm3938_vm0, %v1119_v28  ;;  %3180 = vst.msk [vmem:[%s3857_s20 + $0x26b] ss:$4 sm:$0x3] %vm3938_vm0, %v1119_v28 }
 0x23f   : > { %2797 = vst.msk [vmem:[%s3857_s20 + $0x270] ss:$4 sm:$0x3] %vm3938_vm0, %v1121_v29  ;;  %2925 = vst.msk [vmem:[%s3857_s20 + $0x271] ss:$4 sm:$0x3] %vm3938_vm0, %v1121_v29 }
 0x240   : > { %3053 = vst.msk [vmem:[%s3857_s20 + $0x272] ss:$4 sm:$0x3] %vm3938_vm0, %v1121_v29  ;;  %3181 = vst.msk [vmem:[%s3857_s20 + $0x273] ss:$4 sm:$0x3] %vm3938_vm0, %v1121_v29 }
 0x241   : > { %2802 = vst.msk [vmem:[%s3857_s20 + $0x298] ss:$4 sm:$0x3] %vm3938_vm0, %v1172_v31  ;;  %2930 = vst.msk [vmem:[%s3857_s20 + $0x299] ss:$4 sm:$0x3] %vm3938_vm0, %v1172_v31 }
 0x242   : > { %3058 = vst.msk [vmem:[%s3857_s20 + $0x29a] ss:$4 sm:$0x3] %vm3938_vm0, %v1172_v31  ;;  %3186 = vst.msk [vmem:[%s3857_s20 + $0x29b] ss:$4 sm:$0x3] %vm3938_vm0, %v1172_v31 }
 0x243   : > { %2805 = vst.msk [vmem:[%s3857_s20 + $0x2b0] ss:$4 sm:$0x3] %vm3938_vm0, %v1171_v32  ;;  %2933 = vst.msk [vmem:[%s3857_s20 + $0x2b1] ss:$4 sm:$0x3] %vm3938_vm0, %v1171_v32 }
 0x244   : > { %3061 = vst.msk [vmem:[%s3857_s20 + $0x2b2] ss:$4 sm:$0x3] %vm3938_vm0, %v1171_v32  ;;  %3189 = vst.msk [vmem:[%s3857_s20 + $0x2b3] ss:$4 sm:$0x3] %vm3938_vm0, %v1171_v32 }
 0x245   : > { %2798 = vst.msk [vmem:[%s3857_s20 + $0x278] ss:$4 sm:$0x3] %vm3938_vm0, %v1123_v35  ;;  %2926 = vst.msk [vmem:[%s3857_s20 + $0x279] ss:$4 sm:$0x3] %vm3938_vm0, %v1123_v35 }
 0x246   : > { %3054 = vst.msk [vmem:[%s3857_s20 + $0x27a] ss:$4 sm:$0x3] %vm3938_vm0, %v1123_v35  ;;  %3182 = vst.msk [vmem:[%s3857_s20 + $0x27b] ss:$4 sm:$0x3] %vm3938_vm0, %v1123_v35 }
 0x247   : > { %2804 = vst.msk [vmem:[%s3857_s20 + $0x2a8] ss:$4 sm:$0x3] %vm3938_vm0, %v1169_v36  ;;  %2932 = vst.msk [vmem:[%s3857_s20 + $0x2a9] ss:$4 sm:$0x3] %vm3938_vm0, %v1169_v36 }
 0x248   : > { %3060 = vst.msk [vmem:[%s3857_s20 + $0x2aa] ss:$4 sm:$0x3] %vm3938_vm0, %v1169_v36  ;;  %3188 = vst.msk [vmem:[%s3857_s20 + $0x2ab] ss:$4 sm:$0x3] %vm3938_vm0, %v1169_v36 }
 0x249   : > { %2807 = vst.msk [vmem:[%s3857_s20 + $0x2c0] ss:$4 sm:$0x3] %vm3938_vm0, %v1198_v39  ;;  %2935 = vst.msk [vmem:[%s3857_s20 + $0x2c1] ss:$4 sm:$0x3] %vm3938_vm0, %v1198_v39 }
 0x24a   : > { %3063 = vst.msk [vmem:[%s3857_s20 + $0x2c2] ss:$4 sm:$0x3] %vm3938_vm0, %v1198_v39  ;;  %3191 = vst.msk [vmem:[%s3857_s20 + $0x2c3] ss:$4 sm:$0x3] %vm3938_vm0, %v1198_v39 }
 0x24b   : > { %v5194_v51 = vld [vmem:[#allocation2 + $0xe0] ss:$8 sps:$4 sm:$0xff]   ;;  %2806 = vst.msk [vmem:[%s3857_s20 + $0x2b8] ss:$4 sm:$0x3] %vm3938_vm0, %v1173_v43  ;;  %v5224_v61 = vld [vmem:[#allocation2 + $0xd8] sm:$0xff] }
 0x24c   : > { %2934 = vst.msk [vmem:[%s3857_s20 + $0x2b9] ss:$4 sm:$0x3] %vm3938_vm0, %v1173_v43  ;;  %3062 = vst.msk [vmem:[%s3857_s20 + $0x2ba] ss:$4 sm:$0x3] %vm3938_vm0, %v1173_v43  ;;  %v1275_v12 = vcombine.high %v5222_v56, %v5224_v61  ;;  %v1332_v13 = vrot.slane %v5194_v51, %v3932_v57 }
 0x24d   : > { %3190 = vst.msk [vmem:[%s3857_s20 + $0x2bb] ss:$4 sm:$0x3] %vm3938_vm0, %v1173_v43  ;;  %2815 = vst.msk [vmem:[%s3857_s20 + $0x300] ss:$4 sm:$0x3] %vm3938_vm0, %v1248_v44 }
 0x24e   : > { %2943 = vst.msk [vmem:[%s3857_s20 + $0x301] ss:$4 sm:$0x3] %vm3938_vm0, %v1248_v44  ;;  %3071 = vst.msk [vmem:[%s3857_s20 + $0x302] ss:$4 sm:$0x3] %vm3938_vm0, %v1248_v44  ;;  %v1289_v17 = vrot.slane %v1275_v12, %v3932_v57  ;;  %v1348_v18 = vrot.slane %v1332_v13, %v3932_v57  ;;  %v1340_v19 = vcombine.high %v1332_v13, %v1332_v13 }
 0x24f   : > { %3199 = vst.msk [vmem:[%s3857_s20 + $0x303] ss:$4 sm:$0x3] %vm3938_vm0, %v1248_v44  ;;  %v5226_v58 = vld [vmem:[#allocation2 + $0xf0] ss:$8 sps:$4 sm:$0xff]   ;;  %v5269_v3 = vld [vmem:[#allocation2 + $0xe8] sm:$0xff] }
 0x250   : > { %2808 = vst.msk [vmem:[%s3857_s20 + $0x2c8] ss:$4 sm:$0x3] %vm3938_vm0, %v1212_v47  ;;  %2936 = vst.msk [vmem:[%s3857_s20 + $0x2c9] ss:$4 sm:$0x3] %vm3938_vm0, %v1212_v47  ;;  %v1325_v16 = vcombine.high %v5267_v2, %v5269_v3  ;;  %v1382_v1 = vrot.slane %v5226_v58, %v3932_v57  ;;  %v1305_v25 = vrot.slane %v1289_v17, %v3932_v57 }
 0x251   : > { %3064 = vst.msk [vmem:[%s3857_s20 + $0x2ca] ss:$4 sm:$0x3] %vm3938_vm0, %v1212_v47  ;;  %3192 = vst.msk [vmem:[%s3857_s20 + $0x2cb] ss:$4 sm:$0x3] %vm3938_vm0, %v1212_v47  ;;  %v1291_v26 = vcombine.high %v1289_v17, %v1289_v17  ;;  %v1362_v27 = vrot.slane %v1340_v19, %v3932_v57  ;;  %v1370_v28 = vcombine.high %v1348_v18, %v1348_v18 }
 0x252   : > { %2809 = vst.msk [vmem:[%s3857_s20 + $0x2d0] ss:$4 sm:$0x3] %vm3938_vm0, %v1220_v48  ;;  %2937 = vst.msk [vmem:[%s3857_s20 + $0x2d1] ss:$4 sm:$0x3] %vm3938_vm0, %v1220_v48  ;;  %v1339_v22 = vrot.slane %v1325_v16, %v3932_v57  ;;  %v1398_v23 = vrot.slane %v1382_v1, %v3932_v57  ;;  %v1390_v24 = vcombine.high %v1382_v1, %v1382_v1 }
 0x253   : > { %3065 = vst.msk [vmem:[%s3857_s20 + $0x2d2] ss:$4 sm:$0x3] %vm3938_vm0, %v1220_v48  ;;  %3193 = vst.msk [vmem:[%s3857_s20 + $0x2d3] ss:$4 sm:$0x3] %vm3938_vm0, %v1220_v48  ;;  %v1319_v33 = vrot.slane %v1291_v26, %v3932_v57  ;;  %v1321_v34 = vcombine.high %v1305_v25, %v1305_v25  ;;  %v1372_v35 = vcombine.high %v1362_v27, %v1362_v27 }
 0x254   : > { %2811 = vst.msk [vmem:[%s3857_s20 + $0x2e0] ss:$4 sm:$0x3] %vm3938_vm0, %v1205_v49  ;;  %2939 = vst.msk [vmem:[%s3857_s20 + $0x2e1] ss:$4 sm:$0x3] %vm3938_vm0, %v1205_v49  ;;  %v1355_v29 = vrot.slane %v1339_v22, %v3932_v57  ;;  %v1341_v30 = vcombine.high %v1339_v22, %v1339_v22  ;;  %v1412_v31 = vrot.slane %v1390_v24, %v3932_v57 }
 0x255   : > { %3067 = vst.msk [vmem:[%s3857_s20 + $0x2e2] ss:$4 sm:$0x3] %vm3938_vm0, %v1205_v49  ;;  %3195 = vst.msk [vmem:[%s3857_s20 + $0x2e3] ss:$4 sm:$0x3] %vm3938_vm0, %v1205_v49  ;;  %v1420_v32 = vcombine.high %v1398_v23, %v1398_v23  ;;  %v1323_v40 = vcombine.high %v1319_v33, %v1319_v33 }
 0x256   : > { %2816 = vst.msk [vmem:[%s3857_s20 + $0x308] ss:$4 sm:$0x3] %vm3938_vm0, %v1262_v52  ;;  %2944 = vst.msk [vmem:[%s3857_s20 + $0x309] ss:$4 sm:$0x3] %vm3938_vm0, %v1262_v52  ;;  %v1369_v37 = vrot.slane %v1341_v30, %v3932_v57  ;;  %v1371_v38 = vcombine.high %v1355_v29, %v1355_v29  ;;  %v1422_v39 = vcombine.high %v1412_v31, %v1412_v31 }
 0x257   : > { %3072 = vst.msk [vmem:[%s3857_s20 + $0x30a] ss:$4 sm:$0x3] %vm3938_vm0, %v1262_v52  ;;  %3200 = vst.msk [vmem:[%s3857_s20 + $0x30b] ss:$4 sm:$0x3] %vm3938_vm0, %v1262_v52 }
 0x258   : > { %2817 = vst.msk [vmem:[%s3857_s20 + $0x310] ss:$4 sm:$0x3] %vm3938_vm0, %v1270_v53  ;;  %2945 = vst.msk [vmem:[%s3857_s20 + $0x311] ss:$4 sm:$0x3] %vm3938_vm0, %v1270_v53  ;;  %v1373_v43 = vcombine.high %v1369_v37, %v1369_v37 }
 0x259   : > { %3073 = vst.msk [vmem:[%s3857_s20 + $0x312] ss:$4 sm:$0x3] %vm3938_vm0, %v1270_v53  ;;  %3201 = vst.msk [vmem:[%s3857_s20 + $0x313] ss:$4 sm:$0x3] %vm3938_vm0, %v1270_v53 }
 0x25a   : > { %2819 = vst.msk [vmem:[%s3857_s20 + $0x320] ss:$4 sm:$0x3] %vm3938_vm0, %v1255_v54  ;;  %2947 = vst.msk [vmem:[%s3857_s20 + $0x321] ss:$4 sm:$0x3] %vm3938_vm0, %v1255_v54 }
 0x25b   : > { %3075 = vst.msk [vmem:[%s3857_s20 + $0x322] ss:$4 sm:$0x3] %vm3938_vm0, %v1255_v54  ;;  %3203 = vst.msk [vmem:[%s3857_s20 + $0x323] ss:$4 sm:$0x3] %vm3938_vm0, %v1255_v54 }
 0x25c   : > { %v5310_v8 = vld [vmem:[#allocation2 + $0xf0] sm:$0xff]  ;;  %v5312_v9 = vld [vmem:[#allocation2 + $0xf8] sm:$0xff]  ;;  %2810 = vst.msk [vmem:[%s3857_s20 + $0x2d8] ss:$4 sm:$0x3] %vm3938_vm0, %v1222_v59 }
 0x25d   : > { %2938 = vst.msk [vmem:[%s3857_s20 + $0x2d9] ss:$4 sm:$0x3] %vm3938_vm0, %v1222_v59  ;;  %3066 = vst.msk [vmem:[%s3857_s20 + $0x2da] ss:$4 sm:$0x3] %vm3938_vm0, %v1222_v59  ;;  %v1375_v20 = vcombine.high %v5310_v8, %v5312_v9 }
 0x25e   : > { %3194 = vst.msk [vmem:[%s3857_s20 + $0x2db] ss:$4 sm:$0x3] %vm3938_vm0, %v1222_v59  ;;  %2812 = vst.msk [vmem:[%s3857_s20 + $0x2e8] ss:$4 sm:$0x3] %vm3938_vm0, %v1219_v62 }
 0x25f   : > { %2940 = vst.msk [vmem:[%s3857_s20 + $0x2e9] ss:$4 sm:$0x3] %vm3938_vm0, %v1219_v62  ;;  %3068 = vst.msk [vmem:[%s3857_s20 + $0x2ea] ss:$4 sm:$0x3] %vm3938_vm0, %v1219_v62  ;;  %v1389_v36 = vrot.slane %v1375_v20, %v3932_v57 }
 0x260   : > { %3196 = vst.msk [vmem:[%s3857_s20 + $0x2eb] ss:$4 sm:$0x3] %vm3938_vm0, %v1219_v62  ;;  %2813 = vst.msk [vmem:[%s3857_s20 + $0x2f0] ss:$4 sm:$0x3] %vm3938_vm0, %v1221_v63 }
 0x261   : > { %2941 = vst.msk [vmem:[%s3857_s20 + $0x2f1] ss:$4 sm:$0x3] %vm3938_vm0, %v1221_v63  ;;  %3069 = vst.msk [vmem:[%s3857_s20 + $0x2f2] ss:$4 sm:$0x3] %vm3938_vm0, %v1221_v63  ;;  %v1405_v41 = vrot.slane %v1389_v36, %v3932_v57  ;;  %v1391_v42 = vcombine.high %v1389_v36, %v1389_v36 }
 0x262   : > { %3197 = vst.msk [vmem:[%s3857_s20 + $0x2f3] ss:$4 sm:$0x3] %vm3938_vm0, %v1221_v63  ;;  %2823 = vst.msk [vmem:[%s3857_s20 + $0x340] ss:$4 sm:$0x3] %vm3938_vm0, %v1298_v0 }
 0x263   : > { %2951 = vst.msk [vmem:[%s3857_s20 + $0x341] ss:$4 sm:$0x3] %vm3938_vm0, %v1298_v0  ;;  %3079 = vst.msk [vmem:[%s3857_s20 + $0x342] ss:$4 sm:$0x3] %vm3938_vm0, %v1298_v0  ;;  %v1419_v44 = vrot.slane %v1391_v42, %v3932_v57  ;;  %v1421_v45 = vcombine.high %v1405_v41, %v1405_v41 }
 0x264   : > { %3207 = vst.msk [vmem:[%s3857_s20 + $0x343] ss:$4 sm:$0x3] %vm3938_vm0, %v1298_v0  ;;  %2818 = vst.msk [vmem:[%s3857_s20 + $0x318] ss:$4 sm:$0x3] %vm3938_vm0, %v1272_v4 }
 0x265   : > { %2946 = vst.msk [vmem:[%s3857_s20 + $0x319] ss:$4 sm:$0x3] %vm3938_vm0, %v1272_v4  ;;  %3074 = vst.msk [vmem:[%s3857_s20 + $0x31a] ss:$4 sm:$0x3] %vm3938_vm0, %v1272_v4  ;;  %v1423_v57 = vcombine.high %v1419_v44, %v1419_v44 }
 0x266   : > { %3202 = vst.msk [vmem:[%s3857_s20 + $0x31b] ss:$4 sm:$0x3] %vm3938_vm0, %v1272_v4  ;;  %2820 = vst.msk [vmem:[%s3857_s20 + $0x328] ss:$4 sm:$0x3] %vm3938_vm0, %v1269_v5 }
 0x267   : > { %2948 = vst.msk [vmem:[%s3857_s20 + $0x329] ss:$4 sm:$0x3] %vm3938_vm0, %v1269_v5  ;;  %3076 = vst.msk [vmem:[%s3857_s20 + $0x32a] ss:$4 sm:$0x3] %vm3938_vm0, %v1269_v5 }
 0x268   : > { %3204 = vst.msk [vmem:[%s3857_s20 + $0x32b] ss:$4 sm:$0x3] %vm3938_vm0, %v1269_v5  ;;  %2821 = vst.msk [vmem:[%s3857_s20 + $0x330] ss:$4 sm:$0x3] %vm3938_vm0, %v1271_v6 }
 0x269   : > { %2949 = vst.msk [vmem:[%s3857_s20 + $0x331] ss:$4 sm:$0x3] %vm3938_vm0, %v1271_v6  ;;  %3077 = vst.msk [vmem:[%s3857_s20 + $0x332] ss:$4 sm:$0x3] %vm3938_vm0, %v1271_v6 }
 0x26a   : > { %3205 = vst.msk [vmem:[%s3857_s20 + $0x333] ss:$4 sm:$0x3] %vm3938_vm0, %v1271_v6  ;;  %2814 = vst.msk [vmem:[%s3857_s20 + $0x2f8] ss:$4 sm:$0x3] %vm3938_vm0, %v1223_v10 }
 0x26b   : > { %2942 = vst.msk [vmem:[%s3857_s20 + $0x2f9] ss:$4 sm:$0x3] %vm3938_vm0, %v1223_v10  ;;  %3070 = vst.msk [vmem:[%s3857_s20 + $0x2fa] ss:$4 sm:$0x3] %vm3938_vm0, %v1223_v10 }
 0x26c   : > { %3198 = vst.msk [vmem:[%s3857_s20 + $0x2fb] ss:$4 sm:$0x3] %vm3938_vm0, %v1223_v10  ;;  %2825 = vst.msk [vmem:[%s3857_s20 + $0x350] ss:$4 sm:$0x3] %vm3938_vm0, %v1320_v11 }
 0x26d   : > { %2953 = vst.msk [vmem:[%s3857_s20 + $0x351] ss:$4 sm:$0x3] %vm3938_vm0, %v1320_v11  ;;  %3081 = vst.msk [vmem:[%s3857_s20 + $0x352] ss:$4 sm:$0x3] %vm3938_vm0, %v1320_v11 }
 0x26e   : > { %3209 = vst.msk [vmem:[%s3857_s20 + $0x353] ss:$4 sm:$0x3] %vm3938_vm0, %v1320_v11  ;;  %2822 = vst.msk [vmem:[%s3857_s20 + $0x338] ss:$4 sm:$0x3] %vm3938_vm0, %v1273_v14 }
 0x26f   : > { %2950 = vst.msk [vmem:[%s3857_s20 + $0x339] ss:$4 sm:$0x3] %vm3938_vm0, %v1273_v14  ;;  %3078 = vst.msk [vmem:[%s3857_s20 + $0x33a] ss:$4 sm:$0x3] %vm3938_vm0, %v1273_v14 }
 0x270   : > { %3206 = vst.msk [vmem:[%s3857_s20 + $0x33b] ss:$4 sm:$0x3] %vm3938_vm0, %v1273_v14  ;;  %2824 = vst.msk [vmem:[%s3857_s20 + $0x348] ss:$4 sm:$0x3] %vm3938_vm0, %v1312_v15 }
 0x271   : > { %2952 = vst.msk [vmem:[%s3857_s20 + $0x349] ss:$4 sm:$0x3] %vm3938_vm0, %v1312_v15  ;;  %3080 = vst.msk [vmem:[%s3857_s20 + $0x34a] ss:$4 sm:$0x3] %vm3938_vm0, %v1312_v15 }
 0x272   : > { %3208 = vst.msk [vmem:[%s3857_s20 + $0x34b] ss:$4 sm:$0x3] %vm3938_vm0, %v1312_v15  ;;  %2831 = vst.msk [vmem:[%s3857_s20 + $0x380] ss:$4 sm:$0x3] %vm3938_vm0, %v1348_v18 }
 0x273   : > { %2959 = vst.msk [vmem:[%s3857_s20 + $0x381] ss:$4 sm:$0x3] %vm3938_vm0, %v1348_v18  ;;  %3087 = vst.msk [vmem:[%s3857_s20 + $0x382] ss:$4 sm:$0x3] %vm3938_vm0, %v1348_v18 }
 0x274   : > { %3215 = vst.msk [vmem:[%s3857_s20 + $0x383] ss:$4 sm:$0x3] %vm3938_vm0, %v1348_v18  ;;  %2826 = vst.msk [vmem:[%s3857_s20 + $0x358] ss:$4 sm:$0x3] %vm3938_vm0, %v1322_v21 }
 0x275   : > { %2954 = vst.msk [vmem:[%s3857_s20 + $0x359] ss:$4 sm:$0x3] %vm3938_vm0, %v1322_v21  ;;  %3082 = vst.msk [vmem:[%s3857_s20 + $0x35a] ss:$4 sm:$0x3] %vm3938_vm0, %v1322_v21 }
 0x276   : > { %3210 = vst.msk [vmem:[%s3857_s20 + $0x35b] ss:$4 sm:$0x3] %vm3938_vm0, %v1322_v21  ;;  %2839 = vst.msk [vmem:[%s3857_s20 + $0x3c0] ss:$4 sm:$0x3] %vm3938_vm0, %v1398_v23 }
 0x277   : > { %2967 = vst.msk [vmem:[%s3857_s20 + $0x3c1] ss:$4 sm:$0x3] %vm3938_vm0, %v1398_v23  ;;  %3095 = vst.msk [vmem:[%s3857_s20 + $0x3c2] ss:$4 sm:$0x3] %vm3938_vm0, %v1398_v23 }
 0x278   : > { %3223 = vst.msk [vmem:[%s3857_s20 + $0x3c3] ss:$4 sm:$0x3] %vm3938_vm0, %v1398_v23  ;;  %2827 = vst.msk [vmem:[%s3857_s20 + $0x360] ss:$4 sm:$0x3] %vm3938_vm0, %v1305_v25 }
 0x279   : > { %2955 = vst.msk [vmem:[%s3857_s20 + $0x361] ss:$4 sm:$0x3] %vm3938_vm0, %v1305_v25  ;;  %3083 = vst.msk [vmem:[%s3857_s20 + $0x362] ss:$4 sm:$0x3] %vm3938_vm0, %v1305_v25 }
 0x27a   : > { %3211 = vst.msk [vmem:[%s3857_s20 + $0x363] ss:$4 sm:$0x3] %vm3938_vm0, %v1305_v25  ;;  %2832 = vst.msk [vmem:[%s3857_s20 + $0x388] ss:$4 sm:$0x3] %vm3938_vm0, %v1362_v27 }
 0x27b   : > { %2960 = vst.msk [vmem:[%s3857_s20 + $0x389] ss:$4 sm:$0x3] %vm3938_vm0, %v1362_v27  ;;  %3088 = vst.msk [vmem:[%s3857_s20 + $0x38a] ss:$4 sm:$0x3] %vm3938_vm0, %v1362_v27 }
 0x27c   : > { %3216 = vst.msk [vmem:[%s3857_s20 + $0x38b] ss:$4 sm:$0x3] %vm3938_vm0, %v1362_v27  ;;  %2833 = vst.msk [vmem:[%s3857_s20 + $0x390] ss:$4 sm:$0x3] %vm3938_vm0, %v1370_v28 }
 0x27d   : > { %2961 = vst.msk [vmem:[%s3857_s20 + $0x391] ss:$4 sm:$0x3] %vm3938_vm0, %v1370_v28  ;;  %3089 = vst.msk [vmem:[%s3857_s20 + $0x392] ss:$4 sm:$0x3] %vm3938_vm0, %v1370_v28 }
 0x27e   : > { %3217 = vst.msk [vmem:[%s3857_s20 + $0x393] ss:$4 sm:$0x3] %vm3938_vm0, %v1370_v28  ;;  %2835 = vst.msk [vmem:[%s3857_s20 + $0x3a0] ss:$4 sm:$0x3] %vm3938_vm0, %v1355_v29 }
 0x27f   : > { %2963 = vst.msk [vmem:[%s3857_s20 + $0x3a1] ss:$4 sm:$0x3] %vm3938_vm0, %v1355_v29  ;;  %3091 = vst.msk [vmem:[%s3857_s20 + $0x3a2] ss:$4 sm:$0x3] %vm3938_vm0, %v1355_v29 }
 0x280   : > { %3219 = vst.msk [vmem:[%s3857_s20 + $0x3a3] ss:$4 sm:$0x3] %vm3938_vm0, %v1355_v29  ;;  %2840 = vst.msk [vmem:[%s3857_s20 + $0x3c8] ss:$4 sm:$0x3] %vm3938_vm0, %v1412_v31 }
 0x281   : > { %2968 = vst.msk [vmem:[%s3857_s20 + $0x3c9] ss:$4 sm:$0x3] %vm3938_vm0, %v1412_v31  ;;  %3096 = vst.msk [vmem:[%s3857_s20 + $0x3ca] ss:$4 sm:$0x3] %vm3938_vm0, %v1412_v31 }
 0x282   : > { %3224 = vst.msk [vmem:[%s3857_s20 + $0x3cb] ss:$4 sm:$0x3] %vm3938_vm0, %v1412_v31  ;;  %2841 = vst.msk [vmem:[%s3857_s20 + $0x3d0] ss:$4 sm:$0x3] %vm3938_vm0, %v1420_v32 }
 0x283   : > { %2969 = vst.msk [vmem:[%s3857_s20 + $0x3d1] ss:$4 sm:$0x3] %vm3938_vm0, %v1420_v32  ;;  %3097 = vst.msk [vmem:[%s3857_s20 + $0x3d2] ss:$4 sm:$0x3] %vm3938_vm0, %v1420_v32 }
 0x284   : > { %3225 = vst.msk [vmem:[%s3857_s20 + $0x3d3] ss:$4 sm:$0x3] %vm3938_vm0, %v1420_v32  ;;  %2828 = vst.msk [vmem:[%s3857_s20 + $0x368] ss:$4 sm:$0x3] %vm3938_vm0, %v1319_v33 }
 0x285   : > { %2956 = vst.msk [vmem:[%s3857_s20 + $0x369] ss:$4 sm:$0x3] %vm3938_vm0, %v1319_v33  ;;  %3084 = vst.msk [vmem:[%s3857_s20 + $0x36a] ss:$4 sm:$0x3] %vm3938_vm0, %v1319_v33 }
 0x286   : > { %3212 = vst.msk [vmem:[%s3857_s20 + $0x36b] ss:$4 sm:$0x3] %vm3938_vm0, %v1319_v33  ;;  %2829 = vst.msk [vmem:[%s3857_s20 + $0x370] ss:$4 sm:$0x3] %vm3938_vm0, %v1321_v34 }
 0x287   : > { %2957 = vst.msk [vmem:[%s3857_s20 + $0x371] ss:$4 sm:$0x3] %vm3938_vm0, %v1321_v34  ;;  %3085 = vst.msk [vmem:[%s3857_s20 + $0x372] ss:$4 sm:$0x3] %vm3938_vm0, %v1321_v34 }
 0x288   : > { %3213 = vst.msk [vmem:[%s3857_s20 + $0x373] ss:$4 sm:$0x3] %vm3938_vm0, %v1321_v34  ;;  %2834 = vst.msk [vmem:[%s3857_s20 + $0x398] ss:$4 sm:$0x3] %vm3938_vm0, %v1372_v35 }
 0x289   : > { %2962 = vst.msk [vmem:[%s3857_s20 + $0x399] ss:$4 sm:$0x3] %vm3938_vm0, %v1372_v35  ;;  %3090 = vst.msk [vmem:[%s3857_s20 + $0x39a] ss:$4 sm:$0x3] %vm3938_vm0, %v1372_v35 }
 0x28a   : > { %3218 = vst.msk [vmem:[%s3857_s20 + $0x39b] ss:$4 sm:$0x3] %vm3938_vm0, %v1372_v35  ;;  %2836 = vst.msk [vmem:[%s3857_s20 + $0x3a8] ss:$4 sm:$0x3] %vm3938_vm0, %v1369_v37 }
 0x28b   : > { %2964 = vst.msk [vmem:[%s3857_s20 + $0x3a9] ss:$4 sm:$0x3] %vm3938_vm0, %v1369_v37  ;;  %3092 = vst.msk [vmem:[%s3857_s20 + $0x3aa] ss:$4 sm:$0x3] %vm3938_vm0, %v1369_v37 }
 0x28c   : > { %3220 = vst.msk [vmem:[%s3857_s20 + $0x3ab] ss:$4 sm:$0x3] %vm3938_vm0, %v1369_v37  ;;  %2837 = vst.msk [vmem:[%s3857_s20 + $0x3b0] ss:$4 sm:$0x3] %vm3938_vm0, %v1371_v38 }
 0x28d   : > { %2965 = vst.msk [vmem:[%s3857_s20 + $0x3b1] ss:$4 sm:$0x3] %vm3938_vm0, %v1371_v38  ;;  %3093 = vst.msk [vmem:[%s3857_s20 + $0x3b2] ss:$4 sm:$0x3] %vm3938_vm0, %v1371_v38 }
 0x28e   : > { %3221 = vst.msk [vmem:[%s3857_s20 + $0x3b3] ss:$4 sm:$0x3] %vm3938_vm0, %v1371_v38  ;;  %2842 = vst.msk [vmem:[%s3857_s20 + $0x3d8] ss:$4 sm:$0x3] %vm3938_vm0, %v1422_v39 }
 0x28f   : > { %2970 = vst.msk [vmem:[%s3857_s20 + $0x3d9] ss:$4 sm:$0x3] %vm3938_vm0, %v1422_v39  ;;  %3098 = vst.msk [vmem:[%s3857_s20 + $0x3da] ss:$4 sm:$0x3] %vm3938_vm0, %v1422_v39 }
 0x290   : > { %3226 = vst.msk [vmem:[%s3857_s20 + $0x3db] ss:$4 sm:$0x3] %vm3938_vm0, %v1422_v39  ;;  %2830 = vst.msk [vmem:[%s3857_s20 + $0x378] ss:$4 sm:$0x3] %vm3938_vm0, %v1323_v40 }
 0x291   : > { %2958 = vst.msk [vmem:[%s3857_s20 + $0x379] ss:$4 sm:$0x3] %vm3938_vm0, %v1323_v40  ;;  %3086 = vst.msk [vmem:[%s3857_s20 + $0x37a] ss:$4 sm:$0x3] %vm3938_vm0, %v1323_v40 }
 0x292   : > { %3214 = vst.msk [vmem:[%s3857_s20 + $0x37b] ss:$4 sm:$0x3] %vm3938_vm0, %v1323_v40  ;;  %2843 = vst.msk [vmem:[%s3857_s20 + $0x3e0] ss:$4 sm:$0x3] %vm3938_vm0, %v1405_v41 }
 0x293   : > { %2971 = vst.msk [vmem:[%s3857_s20 + $0x3e1] ss:$4 sm:$0x3] %vm3938_vm0, %v1405_v41  ;;  %3099 = vst.msk [vmem:[%s3857_s20 + $0x3e2] ss:$4 sm:$0x3] %vm3938_vm0, %v1405_v41 }
 0x294   : > { %3227 = vst.msk [vmem:[%s3857_s20 + $0x3e3] ss:$4 sm:$0x3] %vm3938_vm0, %v1405_v41  ;;  %2838 = vst.msk [vmem:[%s3857_s20 + $0x3b8] ss:$4 sm:$0x3] %vm3938_vm0, %v1373_v43 }
 0x295   : > { %2966 = vst.msk [vmem:[%s3857_s20 + $0x3b9] ss:$4 sm:$0x3] %vm3938_vm0, %v1373_v43  ;;  %3094 = vst.msk [vmem:[%s3857_s20 + $0x3ba] ss:$4 sm:$0x3] %vm3938_vm0, %v1373_v43 }
 0x296   : > { %3222 = vst.msk [vmem:[%s3857_s20 + $0x3bb] ss:$4 sm:$0x3] %vm3938_vm0, %v1373_v43  ;;  %2844 = vst.msk [vmem:[%s3857_s20 + $0x3e8] ss:$4 sm:$0x3] %vm3938_vm0, %v1419_v44 }
 0x297   : > { %2972 = vst.msk [vmem:[%s3857_s20 + $0x3e9] ss:$4 sm:$0x3] %vm3938_vm0, %v1419_v44  ;;  %3100 = vst.msk [vmem:[%s3857_s20 + $0x3ea] ss:$4 sm:$0x3] %vm3938_vm0, %v1419_v44 }
 0x298   : > { %3228 = vst.msk [vmem:[%s3857_s20 + $0x3eb] ss:$4 sm:$0x3] %vm3938_vm0, %v1419_v44  ;;  %2845 = vst.msk [vmem:[%s3857_s20 + $0x3f0] ss:$4 sm:$0x3] %vm3938_vm0, %v1421_v45 }
 0x299   : > { %2973 = vst.msk [vmem:[%s3857_s20 + $0x3f1] ss:$4 sm:$0x3] %vm3938_vm0, %v1421_v45  ;;  %3101 = vst.msk [vmem:[%s3857_s20 + $0x3f2] ss:$4 sm:$0x3] %vm3938_vm0, %v1421_v45 }
 0x29a   : > { %3229 = vst.msk [vmem:[%s3857_s20 + $0x3f3] ss:$4 sm:$0x3] %vm3938_vm0, %v1421_v45  ;;  %2846 = vst.msk [vmem:[%s3857_s20 + $0x3f8] ss:$4 sm:$0x3] %vm3938_vm0, %v1423_v57 }
 0x29b   : > { %2974 = vst.msk [vmem:[%s3857_s20 + $0x3f9] ss:$4 sm:$0x3] %vm3938_vm0, %v1423_v57  ;;  %3102 = vst.msk [vmem:[%s3857_s20 + $0x3fa] ss:$4 sm:$0x3] %vm3938_vm0, %v1423_v57 }
 0x29c   : > { %3230 = vst.msk [vmem:[%s3857_s20 + $0x3fb] ss:$4 sm:$0x3] %vm3938_vm0, %v1423_v57 }
 0x29d PF: > { %s3239_s15 = sshll.u32 %s3616_s16, 14  ;;  %s2596_s22 = sshll.u32 %s3857_s20, 4  ;;  %s5729_s22 = int_to_ptr.vmem [resolvable:$true] %s2596_s22 }
 0x29e   : > { %s5726_s4 = scalar_lea.hbm %s5796_s2, %s3239_s15  ;;  %s5733_s1 = scalar_lea.sflag [#allocation5], %s199_s29 }
 0x29f   : > { %s3502_s28 = scalar_lea.vmem %s5729_s22, 16384  ;;  %p5829_p3 = scmp.ne.s32.totalorder %s5812_s27, 0 }
 0x2a0   : > { %p3503_p2 = scmp.ne.s32.totalorder %s5729_s22, %s3502_s28  ;;  %s3640_s16 = smov [#allocation8]  }
 0x2a1   : > { %s3506_s6 = sshll.u32 %s3640_s16, 4  ;;  %s3507_s6 = int_to_ptr.vmem [resolvable:$false] %s3506_s6 }
 0x2a2   : > { %p3504_p6 = pnand %p3503_p2, %p5829_p3  ;;  %s3508_s7 = scalar_lea.vmem %s3507_s6, 32768 }
 0x2a3   : > { %p3509_p12 = scmp.lt.s32.totalorder %s5729_s22, %s3507_s6  ;;  %p3510_p0 = scmp.lt.s32.totalorder %s3508_s7, %s3502_s28 }
 0x2a4   : > { %p3505_p10 = pneg %p3504_p6 }
 0x2a5   : > { %p3511_p8 = por %p3510_p0, %p3509_p12 }
 0x2a7   : > { %p3512_p11 = pnand %p3511_p8, %p3505_p10 }
 0x2a9   : > { %3515 = shalt.err (!%p3512_p11)
}
 0x2aa   : > { %s3516_s8 = scalar_lea.hbm %s5726_s4, 16384  ;;  %s3520_s5 = scalar_lea.hbm %s5796_s2, 32768 }
 0x2ab   : > { %p3517_p13 = scmp.ne.s32.totalorder %s5726_s4, %s3516_s8  ;;  %p3521_p1 = scmp.lt.u32.totalorder %s5726_s4, %s5796_s2 }
 0x2ac   : > { %p3522_p5 = scmp.lt.u32.totalorder %s3520_s5, %s3516_s8  ;;  %p3524_p2 = scmp.lt.u32.totalorder %s3516_s8, %s5726_s4 }
 0x2ad   : > { %p3518_p7 = pnand %p3517_p13, %p5829_p3 }
 0x2ae   : > { %p3523_p4 = por %p3522_p5, %p3521_p1 }
 0x2af   : > { %p3519_p9 = pneg %p3518_p7 }
 0x2b0   : > { %p3525_p6 = por %p3524_p2, %p3523_p4 }
 0x2b2   : > { %p3526_p10 = pnand %p3525_p6, %p3519_p9 }
 0x2b4   : > { %3529 = shalt.err (!%p3526_p10)
}
 0x2b5   : > { %s3641_s26 = smov 128   ;;  %s3642_s21 = smov 8  }
 0x2b6   : > { %3295 = dma.vmem_to_hbm [thread:$0]  (%p5829_p3), %s5729_s22, 16384, %s5726_s4, %s5733_s1, %s3641_s26, %s3641_s26, %s3642_s21  }
 0x2b7 PF: > { %s5830_s3 = sld [smem:[#allocation13_spill]]  ;;  %p3312_p12 = scmp.ge.s32.totalorder %s3628_s19, 2 }
 0x2b8   : > { %s2611_s15 = sand.u32 1, %s3588_s9  }
 0x2b9   : > { %s2612_s12 = scalar_lea.sflag [#allocation5], %s2611_s15 }
 0x2bd   : > { %p5831_p0 = scmp.ne.s32.totalorder %s5830_s3, 0 }
 0x2bf   : > { %p3306_p8 = pnand %p3312_p12, %p5831_p0 }
 0x2c1   : > { %3583 = dma.done.wait (!%p3306_p8), %s2612_s12, 16384  }
 0x2c2   : > { %3585 = vsyncadd (!%p3306_p8), %s2612_s12, 4294950912  ;;  %s19_s19 = sadd.s32 1, %s3628_s19   ;;  %s5832_s15 = sld [smem:[#allocation12_spill]] }
 0x2c3   : > { %p16_p11 = scmp.ge.s32.totalorder %s19_s19, 8   ;;  %s5833_s27 = sld [smem:[#allocation14_spill]] }
 0x2c4   : > { %s5834_s25 = sld [smem:[#allocation15_spill]]  ;;  %s5835_s9 = smov %s3592_s10 }
 0x2c5   : > { %s5836_s10 = smov %s3596_s11  ;;  %s5837_s11 = smov %s3806_s24 }
 0x2c6   : > { %s5838_s12 = smov %s3604_s13  ;;  %s5839_s13 = smov %s3608_s14 }
 0x2c7   : > { %s5840_s14 = smov %s3811_s17  ;;  %s5841_s16 = smov %s3624_s18 }
 0x2c8   :  { %18 = sbr.rel (!%p16_p11) target bundleno = 12 (0xc), region = 597 }
 0x2c9   : > { %s5842_s17 = smov %s5833_s27 }
 0x2ca   : > { %s5843_s18 = smov %s5834_s25 }
 0x2cf   :  { %2617 = vsyncpa [#allocation4], 1 }
 0x2d0   :  { %2619 = vsyncpa [#allocation4 + $0x1], 1 }
 0x2d1   :  { %2620 = vsyncpa [#allocation7], 1 }
 0x2d2   :  { %2621 = vsyncpa [#allocation5], 1 }
 0x2d3   :  { %2623 = vsyncpa [#allocation5 + $0x1], 1 }

</bundles_post_ra>
